<compile_context>
chip_gen: v7x
topology: tpu7x:2x2x1
jax: 0.10.0
libtpu: 0.0.40
codegen_flags: <defaults>
</compile_context>

<pallas_src>
import functools
import math

import jax
import jax.numpy as jnp
from jax.experimental import pallas as pl
from jax.experimental.pallas import tpu as pltpu


# ----------------------------- config (mirrors `opt`) ------------------------
class Opt:
    embed_dim = 32
    pos_dim = 8
    post_dim = 8
    pos_size = 10
    post_size = 10
    hidden_dim = 32          # mem_dim
    rnn_hidden = 32          # attention d_model = 2*rnn_hidden
    rnn_layers = 1
    bidirect = True
    num_layers = 2           # GCN layers
    attention_heads = 4
    gamma = 0.1              # LeakyReLU negative slope
    pyramid = 2              # classifier pyramid depth
    polarities_dim = 3
    rnn_dropout = 0.0
    input_dropout = 0.0
    gcn_dropout = 0.0


def _round_up(x, m):
    return (x + m - 1) // m * m


# ----------------------------- fused Pallas kernel ---------------------------
def _semgcn_fused_kernel(x_ref, kb_ref, rm_ref, am_ref, eye_ref, w_ref, b_ref,
                         out_ref, *, wl, bl, H, d_k, gamma, npyr, n_gcn,
                         mem_dim):
    """Attention adjacency + GCN layers + pooling + classifier head for one
    batch tile, entirely in VMEM/vregs.  `wl`/`bl` are static row layouts of
    the packed weight / bias slabs."""
    f32, bf16 = jnp.float32, jnp.bfloat16

    def mx(a, b):                 # MXU matmul: bf16 inputs, f32 accumulation
        return jnp.dot(a.astype(bf16), b.astype(bf16), preferred_element_type=f32)

    def wblk(name):               # static slice of the packed weight slab
        r0, nr, nc = wl[name]
        return w_ref[r0:r0 + nr, 0:nc]

    def bblk(name):               # static slice of the packed bias slab
        r0, nc = bl[name]
        return b_ref[r0:r0 + 1, 0:nc]

    x = x_ref[...]                                     # (BT, L, D) f32
    BT, L, D = x.shape
    M = mem_dim
    x2 = x.reshape(BT * L, D)                          # sublane-dense slab

    # ---- fused, pre-scaled Q/K projection: one MXU matmul -------------------
    qk = mx(x2, wblk("wqk")) + bblk("bqk")             # (BT*L, 2D)
    q = qk[:, :D].reshape(BT, L, D)
    k = qk[:, D:].reshape(BT, L, D)

    # ---- per-head masked softmax with online head-mean accumulation ---------
    # (peak live score footprint = ONE head; no stacked tensor, no concat)
    kb = kb_ref[...]                                   # (BT, 1, L) additive bias
    adj = None
    for h in range(H):                                 # static unroll
        qh = q[:, :, h * d_k:(h + 1) * d_k]
        kh = k[:, :, h * d_k:(h + 1) * d_k]
        s = jnp.einsum("bld,bmd->blm", qh.astype(bf16), kh.astype(bf16),
                       preferred_element_type=f32) + kb
        s = s - jnp.max(s, axis=-1, keepdims=True)
        p = jnp.exp(s)
        p = p * pl.reciprocal(jnp.sum(p, axis=-1, keepdims=True), approx=True)
        adj = p if adj is None else adj + p
    adj = adj * (1.0 / H)                              # (BT, L, L) head mean

    # zero diagonal, add identity (precomputed eye), then mask_ * adj_sem
    eye = eye_ref[...]                                 # (1, L, L)
    adj = (adj * (1.0 - eye) + eye) * rm_ref[...]      # rm: (BT, L, 1)

    # ---- GCN layers, reordered as A @ (X @ W) + b (identical algebra) -------
    inv_denom = 1.0 / (jnp.sum(adj, axis=-1, keepdims=True) + 1.0)
    adj_b = adj.astype(bf16)
    cur = x2
    g = None
    for li in range(n_gcn):
        xw = mx(cur, wblk(f"w{li}"))                   # (BT*L, M) big MXU matmul
        ax = jnp.einsum("blm,bmd->bld", adj_b,
                        xw.reshape(BT, L, M).astype(bf16),
                        preferred_element_type=f32)    # (BT, L, M)
        ax = (ax + bblk(f"b{li}")) * inv_denom
        g = jnp.where(ax >= 0.0, ax, gamma * ax)       # LeakyReLU(gamma)
        cur = g.reshape(BT * L, M)

    # ---- aspect-masked mean pooling ------------------------------------------
    am = am_ref[...]                                   # (BT, L, 1)
    asp_wn = jnp.maximum(jnp.sum(am, axis=1), 1.0)     # clamp only hits padded rows
    pooled = jnp.sum(g * am, axis=1) / asp_wn          # (BT, M)

    # ---- classifier head: pyramid + W_r + tanh + classifier -------------------
    # cat(h, h) and cat(pyramid outputs) are folded into the packed weights.
    cur = pooled
    r_acc = bblk("b_r")                                # (1, M) -> broadcasts
    for i in range(npyr):
        cur = mx(cur, wblk(f"pw{i}")) + bblk(f"pb{i}")
        r_acc = r_acc + mx(cur, wblk(f"wr{i}"))
    fin = jnp.tanh(r_acc)                              # (BT, M)
    # lane-dense (BT, 128) store; padded logit columns are exactly zero
    out_ref[...] = (mx(fin, wblk("wc")) + bblk("bc")).astype(out_ref.dtype)


# ----------------------------- weight packing --------------------------------
def _pack_params(params, opt, D, M, P_pad, slab_w):
    """Pack every weight matrix into ONE (R, slab_w) f32 slab and every bias
    into ONE (8-padded, slab_w) slab; returns slabs + static row layouts."""
    f32 = jnp.float32
    scale = 1.0 / math.sqrt(D // opt.attention_heads)  # folded 1/sqrt(d_k)

    mats = [("wqk", jnp.concatenate([params["wq"] * scale, params["wk"]], axis=1))]
    for li in range(opt.num_layers):
        mats.append((f"w{li}", params[f"w{li}"]))
    out_dims = [M >> i for i in range(opt.pyramid)]
    off = 0
    for i in range(opt.pyramid):
        pw = params["p_w"][i]
        if i == 0:                           # cat(h,h) @ W == h @ (W_top + W_bot)
            pw = pw[:M] + pw[M:]
        mats.append((f"pw{i}", pw))
        mats.append((f"wr{i}", params["w_r"][off:off + out_dims[i]]))
        off += out_dims[i]
    P = params["w_c"].shape[1]
    wc = jnp.zeros((M, P_pad), f32).at[:, :P].set(params["w_c"])
    mats.append(("wc", wc))

    wl, blocks, r = {}, [], 0
    for name, a in mats:
        nr = _round_up(a.shape[0], 8)
        blk = jnp.zeros((nr, slab_w), f32).at[:a.shape[0], :a.shape[1]].set(a)
        blocks.append(blk)
        wl[name] = (r, a.shape[0], a.shape[1])
        r += nr
    wslab = jnp.concatenate(blocks, axis=0)            # (R, slab_w)

    bias = [("bqk", jnp.concatenate([params["bq"] * scale, params["bk"]]))]
    for li in range(opt.num_layers):
        bias.append((f"b{li}", params[f"b{li}"]))
    for i in range(opt.pyramid):
        bias.append((f"pb{i}", params["p_b"][i]))
    bias.append(("b_r", params["b_r"]))
    bias.append(("bc", jnp.zeros((P_pad,), f32).at[:P].set(params["b_c"])))

    bl, rows = {}, []
    for i, (name, v) in enumerate(bias):
        rows.append(jnp.zeros((slab_w,), f32).at[:v.shape[0]].set(v))
        bl[name] = (i, v.shape[0])
    nrows = _round_up(len(bias), 8)
    rows += [jnp.zeros((slab_w,), f32)] * (nrows - len(bias))
    bslab = jnp.stack(rows)                            # (nrows, slab_w)
    return wslab, wl, bslab, bl


# ----------------------------- Pallas wrapper --------------------------------
def semgcn_pallas(gcn_inputs, tok_mask, aspect_mask, params, opt):
    B, L, D = gcn_inputs.shape
    H = opt.attention_heads
    M = opt.hidden_dim
    P = opt.polarities_dim
    assert D % H == 0 and opt.pyramid >= 1 and opt.num_layers >= 1

    f32 = jnp.float32
    P_pad = 128                               # lane-dense logits block
    L_pad = _round_up(L, 8)                   # sublane-friendly sequence length

    # ---- batch tile sizing: amortize ~0.35us/step overhead & fill MXU rows,
    # keep >= 2 grid steps when B allows (v7x 2-TC megacore), stay under VMEM.
    per_sample = 4 * (6 * L_pad * L_pad + 8 * L_pad * max(D, 128))  # rough f32 bytes
    vmem_budget = 32 * 1024 * 1024            # headroom under v7x's 64 MiB / TC
    bt_cap = max(8, (vmem_budget // per_sample) // 8 * 8)
    if B <= 8:
        BT = B
    elif B <= 128:
        BT = min(_round_up((B + 1) // 2, 8), bt_cap)   # aim for 2 grid steps
    else:
        BT = min(64, bt_cap)
    B_pad = _round_up(B, BT)
    nb = B_pad // BT

    def pad_axis(a, axis, target):
        if a.shape[axis] == target:
            return a
        w = [(0, 0)] * a.ndim
        w[axis] = (0, target - a.shape[axis])
        return jnp.pad(a, w)

    x = pad_axis(pad_axis(gcn_inputs.astype(f32), 1, L_pad), 0, B_pad)
    tm = pad_axis(pad_axis(tok_mask.astype(f32), 1, L_pad), 0, B_pad)
    am = pad_axis(pad_axis(aspect_mask.astype(f32), 1, L_pad), 0, B_pad)

    kb = ((tm - 1.0) * 1e9).reshape(B_pad, 1, L_pad)   # additive key-mask bias
    rm = tm.reshape(B_pad, L_pad, 1)                   # row mask (mask_)
    am3 = am.reshape(B_pad, L_pad, 1)                  # aspect mask
    eye = jnp.eye(L_pad, dtype=f32).reshape(1, L_pad, L_pad)

    slab_w = _round_up(max(2 * D, P_pad), 128)
    wslab, wl, bslab, bl = _pack_params(params, opt, D, M, P_pad, slab_w)

    kernel = functools.partial(
        _semgcn_fused_kernel, wl=wl, bl=bl, H=H, d_k=D // H,
        gamma=float(opt.gamma), npyr=opt.pyramid, n_gcn=opt.num_layers,
        mem_dim=M)

    out = pl.pallas_call(
        kernel,
        out_shape=jax.ShapeDtypeStruct((B_pad, P_pad), f32),
        grid_spec=pltpu.PrefetchScalarGridSpec(
            num_scalar_prefetch=0,
            grid=(nb,),
            in_specs=[
                pl.BlockSpec((BT, L_pad, D), lambda i: (i, 0, 0)),     # x
                pl.BlockSpec((BT, 1, L_pad), lambda i: (i, 0, 0)),     # key-mask bias
                pl.BlockSpec((BT, L_pad, 1), lambda i: (i, 0, 0)),     # row mask
                pl.BlockSpec((BT, L_pad, 1), lambda i: (i, 0, 0)),     # aspect mask
                pl.BlockSpec((1, L_pad, L_pad), lambda i: (0, 0, 0)),  # identity
                pl.BlockSpec(wslab.shape, lambda i: (0, 0)),           # weight slab
                pl.BlockSpec(bslab.shape, lambda i: (0, 0)),           # bias slab
            ],
            out_specs=pl.BlockSpec((BT, P_pad), lambda i: (i, 0)),
        ),
        compiler_params=pltpu.CompilerParams(
            dimension_semantics=("parallel",),
            vmem_limit_bytes=48 * 1024 * 1024),
    )(x, kb, rm, am3, eye, wslab, bslab)
    return out[:B, :P]                         # strip batch / lane padding


# ----------------------------- biLSTM encoder (plain JAX glue) ---------------
# TODO(synk): the packed-sequence LSTM recurrence stays in plain JAX (lax.scan);
# the per-step h-projection is sequential and a poor MXU fit. The input
# projection is hoisted out of the scan as one big matmul.
def _lstm_dir(x, w_ih, w_hh, b_ih, b_hh):
    B, T, _ = x.shape
    Hd = w_hh.shape[1]
    xg = x.reshape(B * T, -1) @ w_ih.T + (b_ih + b_hh)     # hoisted projection
    xg = jnp.swapaxes(xg.reshape(B, T, 4 * Hd), 0, 1)      # (T, B, 4H)

    def step(carry, gates_x):
        h, c = carry
        gates = gates_x + h @ w_hh.T                       # PyTorch order i,f,g,o
        i, f, g, o = jnp.split(gates, 4, axis=-1)
        i = jax.nn.sigmoid(i)
        f = jax.nn.sigmoid(f)
        g = jnp.tanh(g)
        o = jax.nn.sigmoid(o)
        c = f * c + i * g
        h = o * jnp.tanh(c)
        return (h, c), h

    h0 = jnp.zeros((B, Hd), jnp.float32)
    c0 = jnp.zeros((B, Hd), jnp.float32)
    _, ys = jax.lax.scan(step, (h0, c0), xg)
    return jnp.swapaxes(ys, 0, 1)


def bilstm_packed(x, lens, p):
    """Bidirectional LSTM matching pack_padded/pad_packed semantics: the
    backward direction starts at lens[b]-1; outputs past lens[b] are zero."""
    B, T, _ = x.shape
    fwd = _lstm_dir(x, p["w_ih_f"], p["w_hh_f"], p["b_ih_f"], p["b_hh_f"])

    idx = lens[:, None] - 1 - jnp.arange(T)[None, :]
    idx_c = jnp.clip(idx, 0, T - 1)
    x_rev = jnp.take_along_axis(x, idx_c[:, :, None], axis=1)
    bwd_rev = _lstm_dir(x_rev, p["w_ih_b"], p["w_hh_b"], p["b_ih_b"], p["b_hh_b"])
    bwd = jnp.take_along_axis(bwd_rev, idx_c[:, :, None], axis=1)

    out = jnp.concatenate([fwd, bwd], axis=-1)
    valid = (jnp.arange(T)[None, :] < lens[:, None]).astype(out.dtype)[:, :, None]
    return out * valid


# ----------------------------- full model forward ----------------------------
def semgcn_forward(params, tok, pos, post, aspect_mask, lens, *, opt):
    """SemGCNClassifier.forward (eval mode). Assumes max(lens) == tok.shape[1]
    so maxlen is static (no host sync); padded positions are fully masked in
    the kernel, which is numerically equivalent to the maxlen slicing."""
    word = params["emb"][tok]
    pos_e = params["pos_emb"][pos]
    post_e = params["post_emb"][post]
    embs = jnp.concatenate([word, pos_e, post_e], axis=-1)     # (B, T, in_dim)

    gcn_inputs = bilstm_packed(embs, lens, params["lstm"])     # (B, T, 2*rnn_hidden)

    tok_mask = (tok != 0).astype(jnp.float32)
    logits = semgcn_pallas(gcn_inputs, tok_mask,
                           aspect_mask.astype(jnp.float32), params, opt)
    return logits                                              # PyTorch returns (logits, None)


# ----------------------------- deterministic init ----------------------------
def init_params(key, opt, vocab_size=20):
    keys = iter(jax.random.split(key, 64))

    def nrm(shape, scale=0.1):
        return scale * jax.random.normal(next(keys), shape, dtype=jnp.float32)

    in_dim = opt.embed_dim + opt.pos_dim + opt.post_dim
    Hd = opt.rnn_hidden
    D = 2 * Hd
    M = opt.hidden_dim
    P = opt.polarities_dim

    params = dict(
        emb=nrm((vocab_size, opt.embed_dim), 0.5),
        pos_emb=nrm((opt.pos_size, opt.pos_dim), 0.5).at[0].set(0.0),   # padding_idx=0
        post_emb=nrm((opt.post_size, opt.post_dim), 0.5).at[0].set(0.0),
        lstm=dict(
            w_ih_f=nrm((4 * Hd, in_dim)), w_hh_f=nrm((4 * Hd, Hd)),
            b_ih_f=nrm((4 * Hd,)), b_hh_f=nrm((4 * Hd,)),
            w_ih_b=nrm((4 * Hd, in_dim)), w_hh_b=nrm((4 * Hd, Hd)),
            b_ih_b=nrm((4 * Hd,)), b_hh_b=nrm((4 * Hd,)),
        ),
        # MultiHeadAttention linears, stored as (in, out)
        wq=nrm((D, D)), bq=nrm((D,)),
        wk=nrm((D, D)), bk=nrm((D,)),
        # GCN weight_list, stored as (in, out)
        w0=nrm((D, M)), b0=nrm((M,)),
        w1=nrm((M, M)), b1=nrm((M,)),
    )

    # SemGCNClassifier head: pyramid linears, W_r, classifier (all (in, out))
    p_w, p_b = [], []
    cur, total = M, 0
    for _ in range(opt.pyramid):
        total += cur
        p_w.append(nrm((2 * cur, cur)))
        p_b.append(nrm((cur,)))
        cur //= 2
    params.update(p_w=p_w, p_b=p_b,
                  w_r=nrm((total, M)), b_r=nrm((M,)),
                  w_c=nrm((M, P)), b_c=nrm((P,)))
    return params


# ----------------------------- main -------------------------------------------
if __name__ == "__main__":
    opt = Opt()
    params = init_params(jax.random.PRNGKey(0), opt, vocab_size=20)

    B, L = 2, 8
    lens = jnp.array([8, 5], dtype=jnp.int32)            # max(lens) == L
    t = jnp.arange(L)[None, :]
    valid = (t < lens[:, None]).astype(jnp.int32)

    kt, kp, kq = jax.random.split(jax.random.PRNGKey(1), 3)
    tok = (jax.random.randint(kt, (B, L), 1, 20) * valid).astype(jnp.int32)
    pos = (jax.random.randint(kp, (B, L), 1, opt.pos_size) * valid).astype(jnp.int32)
    post = (jax.random.randint(kq, (B, L), 1, opt.post_size) * valid).astype(jnp.int32)

    # aspect mask (the `mask` model input): 1 at aspect-token positions
    aspect_mask = jnp.zeros((B, L), jnp.float32)
    aspect_mask = aspect_mask.at[0, 2:4].set(1.0)
    aspect_mask = aspect_mask.at[1, 1:3].set(1.0)

    fwd = jax.jit(functools.partial(semgcn_forward, opt=opt))
    logits = jax.block_until_ready(fwd(params, tok, pos, post, aspect_mask, lens))

    assert logits.shape == (B, opt.polarities_dim)
    assert bool(jnp.all(jnp.isfinite(logits)))
    print("KERNEL_OK")
</pallas_src>

<mosaic_0001>
module attributes {stable_mosaic.version = 11 : i64} {
  func.func @_semgcn_fused_kernel(%arg0: i32, %arg1: memref<2x8x64xf32, #tpu.memory_space<vmem>>, %arg2: memref<2x1x8xf32, #tpu.memory_space<vmem>>, %arg3: memref<2x8x1xf32, #tpu.memory_space<vmem>>, %arg4: memref<2x8x1xf32, #tpu.memory_space<vmem>>, %arg5: memref<1x8x8xf32, #tpu.memory_space<vmem>>, %arg6: memref<304x128xf32, #tpu.memory_space<vmem>>, %arg7: memref<8x128xf32, #tpu.memory_space<vmem>>, %arg8: memref<2x128xf32, #tpu.memory_space<vmem>>) attributes {dimension_semantics = [#tpu.dimension_semantics<parallel>], iteration_bounds = array<i64: 1>, scalar_prefetch = 0 : i64, scratch_operands = 0 : i64, tpu.core_type = #tpu.core_type<tc>, window_params = [{transform_indices = @transform_0, window_bounds = array<i64: 2, 8, 64>}, {transform_indices = @transform_1, window_bounds = array<i64: 2, 1, 8>}, {transform_indices = @transform_2, window_bounds = array<i64: 2, 8, 1>}, {transform_indices = @transform_3, window_bounds = array<i64: 2, 8, 1>}, {pipeline_mode = #tpu.pipeline_mode<synchronous>, transform_indices = @transform_4, window_bounds = array<i64: 1, 8, 8>}, {pipeline_mode = #tpu.pipeline_mode<synchronous>, transform_indices = @transform_5, window_bounds = array<i64: 304, 128>}, {pipeline_mode = #tpu.pipeline_mode<synchronous>, transform_indices = @transform_6, window_bounds = array<i64: 8, 128>}, {transform_indices = @transform_7, window_bounds = array<i64: 2, 128>}]} {
    %c0 = arith.constant 0 : index
    %c0_0 = arith.constant 0 : index
    %c0_1 = arith.constant 0 : index
    %0 = vector.load %arg1[%c0, %c0_0, %c0_1] : memref<2x8x64xf32, #tpu.memory_space<vmem>>, vector<2x8x64xf32>
    %1 = vector.shape_cast %0 : vector<2x8x64xf32> to vector<16x64xf32>
    %c0_2 = arith.constant 0 : index
    %c0_3 = arith.constant 0 : index
    %2 = vector.load %arg6[%c0_2, %c0_3] : memref<304x128xf32, #tpu.memory_space<vmem>>, vector<64x128xf32>
    %3 = arith.truncf %1 : vector<16x64xf32> to vector<16x64xbf16>
    %4 = arith.truncf %2 : vector<64x128xf32> to vector<64x128xbf16>
    %cst = arith.constant dense<0.000000e+00> : vector<16x128xf32>
    %5 = tpu.matmul %3, %4, %cst {dimension_numbers = #tpu.dot_dimension_numbers<[1], [0], [0], [1], [0, 0, 1, 1], [], []>} : vector<16x64xbf16>, vector<64x128xbf16>, vector<16x128xf32> -> vector<16x128xf32>
    %c0_4 = arith.constant 0 : index
    %c0_5 = arith.constant 0 : index
    %6 = vector.load %arg7[%c0_4, %c0_5] : memref<8x128xf32, #tpu.memory_space<vmem>>, vector<1x128xf32>
    %7 = vector.broadcast %6 : vector<1x128xf32> to vector<16x128xf32>
    %8 = arith.addf %5, %7 : vector<16x128xf32>
    %9 = vector.extract_strided_slice %8 {offsets = [0, 0], sizes = [16, 64], strides = [1, 1]} : vector<16x128xf32> to vector<16x64xf32>
    %10 = vector.shape_cast %9 : vector<16x64xf32> to vector<2x8x64xf32>
    %11 = vector.extract_strided_slice %8 {offsets = [0, 64], sizes = [16, 64], strides = [1, 1]} : vector<16x128xf32> to vector<16x64xf32>
    %12 = vector.shape_cast %11 : vector<16x64xf32> to vector<2x8x64xf32>
    %c0_6 = arith.constant 0 : index
    %c0_7 = arith.constant 0 : index
    %c0_8 = arith.constant 0 : index
    %13 = vector.load %arg2[%c0_6, %c0_7, %c0_8] : memref<2x1x8xf32, #tpu.memory_space<vmem>>, vector<2x1x8xf32>
    %14 = vector.extract_strided_slice %10 {offsets = [0, 0, 0], sizes = [2, 8, 16], strides = [1, 1, 1]} : vector<2x8x64xf32> to vector<2x8x16xf32>
    %15 = vector.extract_strided_slice %12 {offsets = [0, 0, 0], sizes = [2, 8, 16], strides = [1, 1, 1]} : vector<2x8x64xf32> to vector<2x8x16xf32>
    %16 = arith.truncf %14 : vector<2x8x16xf32> to vector<2x8x16xbf16>
    %17 = arith.truncf %15 : vector<2x8x16xf32> to vector<2x8x16xbf16>
    "tpu.trace_start"() <{level = 10 : i32, message = "bld,bmd->blm"}> : () -> ()
    %cst_9 = arith.constant dense<0.000000e+00> : vector<2x8x8xf32>
    %18 = tpu.matmul %16, %17, %cst_9 {dimension_numbers = #tpu.dot_dimension_numbers<[2], [2], [1], [1], [0, 0, 0, 1, 1, 1], [0], [0]>} : vector<2x8x16xbf16>, vector<2x8x16xbf16>, vector<2x8x8xf32> -> vector<2x8x8xf32>
    "tpu.trace_stop"() : () -> ()
    %19 = vector.broadcast %13 : vector<2x1x8xf32> to vector<2x8x8xf32>
    %20 = arith.addf %18, %19 : vector<2x8x8xf32>
    %cst_10 = arith.constant dense<0xFF800000> : vector<2x8xf32>
    %21 = vector.multi_reduction <maximumf>, %20, %cst_10 [2] : vector<2x8x8xf32> to vector<2x8xf32>
    %22 = vector.shape_cast %21 : vector<2x8xf32> to vector<2x8x1xf32>
    %23 = vector.broadcast %22 : vector<2x8x1xf32> to vector<2x8x8xf32>
    %24 = arith.subf %20, %23 : vector<2x8x8xf32>
    %25 = math.exp %24 : vector<2x8x8xf32>
    %cst_11 = arith.constant dense<0.000000e+00> : vector<2x8xf32>
    %26 = vector.multi_reduction <add>, %25, %cst_11 [2] : vector<2x8x8xf32> to vector<2x8xf32>
    %27 = vector.shape_cast %26 : vector<2x8xf32> to vector<2x8x1xf32>
    %28 = tpu.reciprocal %27 {approx = true} : vector<2x8x1xf32> -> vector<2x8x1xf32>
    %29 = vector.broadcast %28 : vector<2x8x1xf32> to vector<2x8x8xf32>
    %30 = arith.mulf %25, %29 : vector<2x8x8xf32>
    %31 = vector.extract_strided_slice %10 {offsets = [0, 0, 16], sizes = [2, 8, 16], strides = [1, 1, 1]} : vector<2x8x64xf32> to vector<2x8x16xf32>
    %32 = vector.extract_strided_slice %12 {offsets = [0, 0, 16], sizes = [2, 8, 16], strides = [1, 1, 1]} : vector<2x8x64xf32> to vector<2x8x16xf32>
    %33 = arith.truncf %31 : vector<2x8x16xf32> to vector<2x8x16xbf16>
    %34 = arith.truncf %32 : vector<2x8x16xf32> to vector<2x8x16xbf16>
    "tpu.trace_start"() <{level = 10 : i32, message = "bld,bmd->blm"}> : () -> ()
    %cst_12 = arith.constant dense<0.000000e+00> : vector<2x8x8xf32>
    %35 = tpu.matmul %33, %34, %cst_12 {dimension_numbers = #tpu.dot_dimension_numbers<[2], [2], [1], [1], [0, 0, 0, 1, 1, 1], [0], [0]>} : vector<2x8x16xbf16>, vector<2x8x16xbf16>, vector<2x8x8xf32> -> vector<2x8x8xf32>
    "tpu.trace_stop"() : () -> ()
    %36 = vector.broadcast %13 : vector<2x1x8xf32> to vector<2x8x8xf32>
    %37 = arith.addf %35, %36 : vector<2x8x8xf32>
    %cst_13 = arith.constant dense<0xFF800000> : vector<2x8xf32>
    %38 = vector.multi_reduction <maximumf>, %37, %cst_13 [2] : vector<2x8x8xf32> to vector<2x8xf32>
    %39 = vector.shape_cast %38 : vector<2x8xf32> to vector<2x8x1xf32>
    %40 = vector.broadcast %39 : vector<2x8x1xf32> to vector<2x8x8xf32>
    %41 = arith.subf %37, %40 : vector<2x8x8xf32>
    %42 = math.exp %41 : vector<2x8x8xf32>
    %cst_14 = arith.constant dense<0.000000e+00> : vector<2x8xf32>
    %43 = vector.multi_reduction <add>, %42, %cst_14 [2] : vector<2x8x8xf32> to vector<2x8xf32>
    %44 = vector.shape_cast %43 : vector<2x8xf32> to vector<2x8x1xf32>
    %45 = tpu.reciprocal %44 {approx = true} : vector<2x8x1xf32> -> vector<2x8x1xf32>
    %46 = vector.broadcast %45 : vector<2x8x1xf32> to vector<2x8x8xf32>
    %47 = arith.mulf %42, %46 : vector<2x8x8xf32>
    %48 = arith.addf %30, %47 : vector<2x8x8xf32>
    %49 = vector.extract_strided_slice %10 {offsets = [0, 0, 32], sizes = [2, 8, 16], strides = [1, 1, 1]} : vector<2x8x64xf32> to vector<2x8x16xf32>
    %50 = vector.extract_strided_slice %12 {offsets = [0, 0, 32], sizes = [2, 8, 16], strides = [1, 1, 1]} : vector<2x8x64xf32> to vector<2x8x16xf32>
    %51 = arith.truncf %49 : vector<2x8x16xf32> to vector<2x8x16xbf16>
    %52 = arith.truncf %50 : vector<2x8x16xf32> to vector<2x8x16xbf16>
    "tpu.trace_start"() <{level = 10 : i32, message = "bld,bmd->blm"}> : () -> ()
    %cst_15 = arith.constant dense<0.000000e+00> : vector<2x8x8xf32>
    %53 = tpu.matmul %51, %52, %cst_15 {dimension_numbers = #tpu.dot_dimension_numbers<[2], [2], [1], [1], [0, 0, 0, 1, 1, 1], [0], [0]>} : vector<2x8x16xbf16>, vector<2x8x16xbf16>, vector<2x8x8xf32> -> vector<2x8x8xf32>
    "tpu.trace_stop"() : () -> ()
    %54 = vector.broadcast %13 : vector<2x1x8xf32> to vector<2x8x8xf32>
    %55 = arith.addf %53, %54 : vector<2x8x8xf32>
    %cst_16 = arith.constant dense<0xFF800000> : vector<2x8xf32>
    %56 = vector.multi_reduction <maximumf>, %55, %cst_16 [2] : vector<2x8x8xf32> to vector<2x8xf32>
    %57 = vector.shape_cast %56 : vector<2x8xf32> to vector<2x8x1xf32>
    %58 = vector.broadcast %57 : vector<2x8x1xf32> to vector<2x8x8xf32>
    %59 = arith.subf %55, %58 : vector<2x8x8xf32>
    %60 = math.exp %59 : vector<2x8x8xf32>
    %cst_17 = arith.constant dense<0.000000e+00> : vector<2x8xf32>
    %61 = vector.multi_reduction <add>, %60, %cst_17 [2] : vector<2x8x8xf32> to vector<2x8xf32>
    %62 = vector.shape_cast %61 : vector<2x8xf32> to vector<2x8x1xf32>
    %63 = tpu.reciprocal %62 {approx = true} : vector<2x8x1xf32> -> vector<2x8x1xf32>
    %64 = vector.broadcast %63 : vector<2x8x1xf32> to vector<2x8x8xf32>
    %65 = arith.mulf %60, %64 : vector<2x8x8xf32>
    %66 = arith.addf %48, %65 : vector<2x8x8xf32>
    %67 = vector.extract_strided_slice %10 {offsets = [0, 0, 48], sizes = [2, 8, 16], strides = [1, 1, 1]} : vector<2x8x64xf32> to vector<2x8x16xf32>
    %68 = vector.extract_strided_slice %12 {offsets = [0, 0, 48], sizes = [2, 8, 16], strides = [1, 1, 1]} : vector<2x8x64xf32> to vector<2x8x16xf32>
    %69 = arith.truncf %67 : vector<2x8x16xf32> to vector<2x8x16xbf16>
    %70 = arith.truncf %68 : vector<2x8x16xf32> to vector<2x8x16xbf16>
    "tpu.trace_start"() <{level = 10 : i32, message = "bld,bmd->blm"}> : () -> ()
    %cst_18 = arith.constant dense<0.000000e+00> : vector<2x8x8xf32>
    %71 = tpu.matmul %69, %70, %cst_18 {dimension_numbers = #tpu.dot_dimension_numbers<[2], [2], [1], [1], [0, 0, 0, 1, 1, 1], [0], [0]>} : vector<2x8x16xbf16>, vector<2x8x16xbf16>, vector<2x8x8xf32> -> vector<2x8x8xf32>
    "tpu.trace_stop"() : () -> ()
    %72 = vector.broadcast %13 : vector<2x1x8xf32> to vector<2x8x8xf32>
    %73 = arith.addf %71, %72 : vector<2x8x8xf32>
    %cst_19 = arith.constant dense<0xFF800000> : vector<2x8xf32>
    %74 = vector.multi_reduction <maximumf>, %73, %cst_19 [2] : vector<2x8x8xf32> to vector<2x8xf32>
    %75 = vector.shape_cast %74 : vector<2x8xf32> to vector<2x8x1xf32>
    %76 = vector.broadcast %75 : vector<2x8x1xf32> to vector<2x8x8xf32>
    %77 = arith.subf %73, %76 : vector<2x8x8xf32>
    %78 = math.exp %77 : vector<2x8x8xf32>
    %cst_20 = arith.constant dense<0.000000e+00> : vector<2x8xf32>
    %79 = vector.multi_reduction <add>, %78, %cst_20 [2] : vector<2x8x8xf32> to vector<2x8xf32>
    %80 = vector.shape_cast %79 : vector<2x8xf32> to vector<2x8x1xf32>
    %81 = tpu.reciprocal %80 {approx = true} : vector<2x8x1xf32> -> vector<2x8x1xf32>
    %82 = vector.broadcast %81 : vector<2x8x1xf32> to vector<2x8x8xf32>
    %83 = arith.mulf %78, %82 : vector<2x8x8xf32>
    %84 = arith.addf %66, %83 : vector<2x8x8xf32>
    %cst_21 = arith.constant 2.500000e-01 : f32
    %85 = vector.broadcast %cst_21 : f32 to vector<2x8x8xf32>
    %86 = arith.mulf %84, %85 : vector<2x8x8xf32>
    %c0_22 = arith.constant 0 : index
    %c0_23 = arith.constant 0 : index
    %c0_24 = arith.constant 0 : index
    %87 = vector.load %arg5[%c0_22, %c0_23, %c0_24] : memref<1x8x8xf32, #tpu.memory_space<vmem>>, vector<1x8x8xf32>
    %cst_25 = arith.constant 1.000000e+00 : f32
    %88 = vector.broadcast %cst_25 : f32 to vector<1x8x8xf32>
    %89 = arith.subf %88, %87 : vector<1x8x8xf32>
    %90 = vector.broadcast %89 : vector<1x8x8xf32> to vector<2x8x8xf32>
    %91 = arith.mulf %86, %90 : vector<2x8x8xf32>
    %92 = vector.broadcast %87 : vector<1x8x8xf32> to vector<2x8x8xf32>
    %93 = arith.addf %91, %92 : vector<2x8x8xf32>
    %c0_26 = arith.constant 0 : index
    %c0_27 = arith.constant 0 : index
    %c0_28 = arith.constant 0 : index
    %94 = vector.load %arg3[%c0_26, %c0_27, %c0_28] : memref<2x8x1xf32, #tpu.memory_space<vmem>>, vector<2x8x1xf32>
    %95 = vector.broadcast %94 : vector<2x8x1xf32> to vector<2x8x8xf32>
    %96 = arith.mulf %93, %95 : vector<2x8x8xf32>
    %cst_29 = arith.constant dense<0.000000e+00> : vector<2x8xf32>
    %97 = vector.multi_reduction <add>, %96, %cst_29 [2] : vector<2x8x8xf32> to vector<2x8xf32>
    %98 = vector.shape_cast %97 : vector<2x8xf32> to vector<2x8x1xf32>
    %cst_30 = arith.constant 1.000000e+00 : f32
    %99 = vector.broadcast %cst_30 : f32 to vector<2x8x1xf32>
    %100 = arith.addf %98, %99 : vector<2x8x1xf32>
    %cst_31 = arith.constant 1.000000e+00 : f32
    %101 = vector.broadcast %cst_31 : f32 to vector<2x8x1xf32>
    %102 = arith.divf %101, %100 : vector<2x8x1xf32>
    %103 = arith.truncf %96 : vector<2x8x8xf32> to vector<2x8x8xbf16>
    %c64 = arith.constant 64 : index
    %c0_32 = arith.constant 0 : index
    %104 = vector.load %arg6[%c64, %c0_32] : memref<304x128xf32, #tpu.memory_space<vmem>>, vector<64x32xf32>
    %105 = arith.truncf %1 : vector<16x64xf32> to vector<16x64xbf16>
    %106 = arith.truncf %104 : vector<64x32xf32> to vector<64x32xbf16>
    %cst_33 = arith.constant dense<0.000000e+00> : vector<16x32xf32>
    %107 = tpu.matmul %105, %106, %cst_33 {dimension_numbers = #tpu.dot_dimension_numbers<[1], [0], [0], [1], [0, 0, 1, 1], [], []>} : vector<16x64xbf16>, vector<64x32xbf16>, vector<16x32xf32> -> vector<16x32xf32>
    %108 = vector.shape_cast %107 : vector<16x32xf32> to vector<2x8x32xf32>
    %109 = arith.truncf %108 : vector<2x8x32xf32> to vector<2x8x32xbf16>
    "tpu.trace_start"() <{level = 10 : i32, message = "blm,bmd->bld"}> : () -> ()
    %cst_34 = arith.constant dense<0.000000e+00> : vector<2x8x32xf32>
    %110 = tpu.matmul %103, %109, %cst_34 {dimension_numbers = #tpu.dot_dimension_numbers<[2], [1], [1], [2], [0, 0, 0, 1, 1, 2], [0], [0]>} : vector<2x8x8xbf16>, vector<2x8x32xbf16>, vector<2x8x32xf32> -> vector<2x8x32xf32>
    "tpu.trace_stop"() : () -> ()
    %c1 = arith.constant 1 : index
    %c0_35 = arith.constant 0 : index
    %111 = vector.load %arg7[%c1, %c0_35] : memref<8x128xf32, #tpu.memory_space<vmem>>, vector<1x32xf32>
    %112 = vector.shape_cast %111 : vector<1x32xf32> to vector<1x1x32xf32>
    %113 = vector.broadcast %112 : vector<1x1x32xf32> to vector<2x8x32xf32>
    %114 = arith.addf %110, %113 : vector<2x8x32xf32>
    %115 = vector.broadcast %102 : vector<2x8x1xf32> to vector<2x8x32xf32>
    %116 = arith.mulf %114, %115 : vector<2x8x32xf32>
    %cst_36 = arith.constant 0.000000e+00 : f32
    %117 = vector.broadcast %cst_36 : f32 to vector<2x8x32xf32>
    %118 = arith.cmpf oge, %116, %117 : vector<2x8x32xf32>
    %cst_37 = arith.constant 1.000000e-01 : f32
    %119 = vector.broadcast %cst_37 : f32 to vector<2x8x32xf32>
    %120 = arith.mulf %119, %116 : vector<2x8x32xf32>
    %121 = arith.select %118, %116, %120 : vector<2x8x32xi1>, vector<2x8x32xf32>
    %122 = vector.shape_cast %121 : vector<2x8x32xf32> to vector<16x32xf32>
    %c128 = arith.constant 128 : index
    %c0_38 = arith.constant 0 : index
    %123 = vector.load %arg6[%c128, %c0_38] : memref<304x128xf32, #tpu.memory_space<vmem>>, vector<32x32xf32>
    %124 = arith.truncf %122 : vector<16x32xf32> to vector<16x32xbf16>
    %125 = arith.truncf %123 : vector<32x32xf32> to vector<32x32xbf16>
    %cst_39 = arith.constant dense<0.000000e+00> : vector<16x32xf32>
    %126 = tpu.matmul %124, %125, %cst_39 {dimension_numbers = #tpu.dot_dimension_numbers<[1], [0], [0], [1], [0, 0, 1, 1], [], []>} : vector<16x32xbf16>, vector<32x32xbf16>, vector<16x32xf32> -> vector<16x32xf32>
    %127 = vector.shape_cast %126 : vector<16x32xf32> to vector<2x8x32xf32>
    %128 = arith.truncf %127 : vector<2x8x32xf32> to vector<2x8x32xbf16>
    "tpu.trace_start"() <{level = 10 : i32, message = "blm,bmd->bld"}> : () -> ()
    %cst_40 = arith.constant dense<0.000000e+00> : vector<2x8x32xf32>
    %129 = tpu.matmul %103, %128, %cst_40 {dimension_numbers = #tpu.dot_dimension_numbers<[2], [1], [1], [2], [0, 0, 0, 1, 1, 2], [0], [0]>} : vector<2x8x8xbf16>, vector<2x8x32xbf16>, vector<2x8x32xf32> -> vector<2x8x32xf32>
    "tpu.trace_stop"() : () -> ()
    %c2 = arith.constant 2 : index
    %c0_41 = arith.constant 0 : index
    %130 = vector.load %arg7[%c2, %c0_41] : memref<8x128xf32, #tpu.memory_space<vmem>>, vector<1x32xf32>
    %131 = vector.shape_cast %130 : vector<1x32xf32> to vector<1x1x32xf32>
    %132 = vector.broadcast %131 : vector<1x1x32xf32> to vector<2x8x32xf32>
    %133 = arith.addf %129, %132 : vector<2x8x32xf32>
    %134 = vector.broadcast %102 : vector<2x8x1xf32> to vector<2x8x32xf32>
    %135 = arith.mulf %133, %134 : vector<2x8x32xf32>
    %cst_42 = arith.constant 0.000000e+00 : f32
    %136 = vector.broadcast %cst_42 : f32 to vector<2x8x32xf32>
    %137 = arith.cmpf oge, %135, %136 : vector<2x8x32xf32>
    %cst_43 = arith.constant 1.000000e-01 : f32
    %138 = vector.broadcast %cst_43 : f32 to vector<2x8x32xf32>
    %139 = arith.mulf %138, %135 : vector<2x8x32xf32>
    %140 = arith.select %137, %135, %139 : vector<2x8x32xi1>, vector<2x8x32xf32>
    %c0_44 = arith.constant 0 : index
    %c0_45 = arith.constant 0 : index
    %c0_46 = arith.constant 0 : index
    %141 = vector.load %arg4[%c0_44, %c0_45, %c0_46] : memref<2x8x1xf32, #tpu.memory_space<vmem>>, vector<2x8x1xf32>
    %cst_47 = arith.constant dense<0.000000e+00> : vector<2x1xf32>
    %142 = vector.multi_reduction <add>, %141, %cst_47 [1] : vector<2x8x1xf32> to vector<2x1xf32>
    %cst_48 = arith.constant 1.000000e+00 : f32
    %143 = vector.broadcast %cst_48 : f32 to vector<2x1xf32>
    %144 = arith.maximumf %142, %143 : vector<2x1xf32>
    %145 = vector.broadcast %141 : vector<2x8x1xf32> to vector<2x8x32xf32>
    %146 = arith.mulf %140, %145 : vector<2x8x32xf32>
    %cst_49 = arith.constant dense<0.000000e+00> : vector<2x32xf32>
    %147 = vector.multi_reduction <add>, %146, %cst_49 [1] : vector<2x8x32xf32> to vector<2x32xf32>
    %148 = vector.broadcast %144 : vector<2x1xf32> to vector<2x32xf32>
    %149 = arith.divf %147, %148 : vector<2x32xf32>
    %c5 = arith.constant 5 : index
    %c0_50 = arith.constant 0 : index
    %150 = vector.load %arg7[%c5, %c0_50] : memref<8x128xf32, #tpu.memory_space<vmem>>, vector<1x32xf32>
    %c160 = arith.constant 160 : index
    %c0_51 = arith.constant 0 : index
    %151 = vector.load %arg6[%c160, %c0_51] : memref<304x128xf32, #tpu.memory_space<vmem>>, vector<32x32xf32>
    %152 = arith.truncf %149 : vector<2x32xf32> to vector<2x32xbf16>
    %153 = arith.truncf %151 : vector<32x32xf32> to vector<32x32xbf16>
    %cst_52 = arith.constant dense<0.000000e+00> : vector<2x32xf32>
    %154 = tpu.matmul %152, %153, %cst_52 {dimension_numbers = #tpu.dot_dimension_numbers<[1], [0], [0], [1], [0, 0, 1, 1], [], []>} : vector<2x32xbf16>, vector<32x32xbf16>, vector<2x32xf32> -> vector<2x32xf32>
    %c3 = arith.constant 3 : index
    %c0_53 = arith.constant 0 : index
    %155 = vector.load %arg7[%c3, %c0_53] : memref<8x128xf32, #tpu.memory_space<vmem>>, vector<1x32xf32>
    %156 = vector.broadcast %155 : vector<1x32xf32> to vector<2x32xf32>
    %157 = arith.addf %154, %156 : vector<2x32xf32>
    %c192 = arith.constant 192 : index
    %c0_54 = arith.constant 0 : index
    %158 = vector.load %arg6[%c192, %c0_54] : memref<304x128xf32, #tpu.memory_space<vmem>>, vector<32x32xf32>
    %159 = arith.truncf %157 : vector<2x32xf32> to vector<2x32xbf16>
    %160 = arith.truncf %158 : vector<32x32xf32> to vector<32x32xbf16>
    %cst_55 = arith.constant dense<0.000000e+00> : vector<2x32xf32>
    %161 = tpu.matmul %159, %160, %cst_55 {dimension_numbers = #tpu.dot_dimension_numbers<[1], [0], [0], [1], [0, 0, 1, 1], [], []>} : vector<2x32xbf16>, vector<32x32xbf16>, vector<2x32xf32> -> vector<2x32xf32>
    %162 = vector.broadcast %150 : vector<1x32xf32> to vector<2x32xf32>
    %163 = arith.addf %162, %161 : vector<2x32xf32>
    %c224 = arith.constant 224 : index
    %c0_56 = arith.constant 0 : index
    %164 = vector.load %arg6[%c224, %c0_56] : memref<304x128xf32, #tpu.memory_space<vmem>>, vector<32x16xf32>
    %165 = arith.truncf %157 : vector<2x32xf32> to vector<2x32xbf16>
    %166 = arith.truncf %164 : vector<32x16xf32> to vector<32x16xbf16>
    %cst_57 = arith.constant dense<0.000000e+00> : vector<2x16xf32>
    %167 = tpu.matmul %165, %166, %cst_57 {dimension_numbers = #tpu.dot_dimension_numbers<[1], [0], [0], [1], [0, 0, 1, 1], [], []>} : vector<2x32xbf16>, vector<32x16xbf16>, vector<2x16xf32> -> vector<2x16xf32>
    %c4 = arith.constant 4 : index
    %c0_58 = arith.constant 0 : index
    %168 = vector.load %arg7[%c4, %c0_58] : memref<8x128xf32, #tpu.memory_space<vmem>>, vector<1x16xf32>
    %169 = vector.broadcast %168 : vector<1x16xf32> to vector<2x16xf32>
    %170 = arith.addf %167, %169 : vector<2x16xf32>
    %c256 = arith.constant 256 : index
    %c0_59 = arith.constant 0 : index
    %171 = vector.load %arg6[%c256, %c0_59] : memref<304x128xf32, #tpu.memory_space<vmem>>, vector<16x32xf32>
    %172 = arith.truncf %170 : vector<2x16xf32> to vector<2x16xbf16>
    %173 = arith.truncf %171 : vector<16x32xf32> to vector<16x32xbf16>
    %cst_60 = arith.constant dense<0.000000e+00> : vector<2x32xf32>
    %174 = tpu.matmul %172, %173, %cst_60 {dimension_numbers = #tpu.dot_dimension_numbers<[1], [0], [0], [1], [0, 0, 1, 1], [], []>} : vector<2x16xbf16>, vector<16x32xbf16>, vector<2x32xf32> -> vector<2x32xf32>
    %175 = arith.addf %163, %174 : vector<2x32xf32>
    %176 = math.tanh %175 : vector<2x32xf32>
    %c272 = arith.constant 272 : index
    %c0_61 = arith.constant 0 : index
    %177 = vector.load %arg6[%c272, %c0_61] : memref<304x128xf32, #tpu.memory_space<vmem>>, vector<32x128xf32>
    %178 = arith.truncf %176 : vector<2x32xf32> to vector<2x32xbf16>
    %179 = arith.truncf %177 : vector<32x128xf32> to vector<32x128xbf16>
    %cst_62 = arith.constant dense<0.000000e+00> : vector<2x128xf32>
    %180 = tpu.matmul %178, %179, %cst_62 {dimension_numbers = #tpu.dot_dimension_numbers<[1], [0], [0], [1], [0, 0, 1, 1], [], []>} : vector<2x32xbf16>, vector<32x128xbf16>, vector<2x128xf32> -> vector<2x128xf32>
    %c6 = arith.constant 6 : index
    %c0_63 = arith.constant 0 : index
    %181 = vector.load %arg7[%c6, %c0_63] : memref<8x128xf32, #tpu.memory_space<vmem>>, vector<1x128xf32>
    %182 = vector.broadcast %181 : vector<1x128xf32> to vector<2x128xf32>
    %183 = arith.addf %180, %182 : vector<2x128xf32>
    %c0_64 = arith.constant 0 : index
    %c0_65 = arith.constant 0 : index
    %184 = vector.load %arg8[%c0_64, %c0_65] : memref<2x128xf32, #tpu.memory_space<vmem>>, vector<2x128xf32>
    tpu.vector_store %arg8[%c0_64, %c0_65], %183 {strides = array<i32>} : memref<2x128xf32, #tpu.memory_space<vmem>>, vector<2x128xf32>,
    return
  }
  func.func @transform_0(%arg0: i32) -> (i32, i32, i32) {
    %c0_i32 = arith.constant 0 : i32
    %c0_i32_0 = arith.constant 0 : i32
    %c0_i32_1 = arith.constant 0 : i32
    return %arg0, %c0_i32, %c0_i32_0 : i32, i32, i32
  }
  func.func @transform_1(%arg0: i32) -> (i32, i32, i32) {
    %c0_i32 = arith.constant 0 : i32
    %c0_i32_0 = arith.constant 0 : i32
    %c0_i32_1 = arith.constant 0 : i32
    return %arg0, %c0_i32, %c0_i32_0 : i32, i32, i32
  }
  func.func @transform_2(%arg0: i32) -> (i32, i32, i32) {
    %c0_i32 = arith.constant 0 : i32
    %c0_i32_0 = arith.constant 0 : i32
    %c0_i32_1 = arith.constant 0 : i32
    return %arg0, %c0_i32, %c0_i32_0 : i32, i32, i32
  }
  func.func @transform_3(%arg0: i32) -> (i32, i32, i32) {
    %c0_i32 = arith.constant 0 : i32
    %c0_i32_0 = arith.constant 0 : i32
    %c0_i32_1 = arith.constant 0 : i32
    return %arg0, %c0_i32, %c0_i32_0 : i32, i32, i32
  }
  func.func @transform_4(%arg0: i32) -> (i32, i32, i32) {
    %c0_i32 = arith.constant 0 : i32
    %c0_i32_0 = arith.constant 0 : i32
    %c0_i32_1 = arith.constant 0 : i32
    %c0_i32_2 = arith.constant 0 : i32
    return %c0_i32, %c0_i32_0, %c0_i32_1 : i32, i32, i32
  }
  func.func @transform_5(%arg0: i32) -> (i32, i32) {
    %c0_i32 = arith.constant 0 : i32
    %c0_i32_0 = arith.constant 0 : i32
    %c0_i32_1 = arith.constant 0 : i32
    return %c0_i32, %c0_i32_0 : i32, i32
  }
  func.func @transform_6(%arg0: i32) -> (i32, i32) {
    %c0_i32 = arith.constant 0 : i32
    %c0_i32_0 = arith.constant 0 : i32
    %c0_i32_1 = arith.constant 0 : i32
    return %c0_i32, %c0_i32_0 : i32, i32
  }
  func.func @transform_7(%arg0: i32) -> (i32, i32) {
    %c0_i32 = arith.constant 0 : i32
    %c0_i32_0 = arith.constant 0 : i32
    return %arg0, %c0_i32 : i32, i32
  }
}

</mosaic_0001>

<bundles_post_ra>
// kernel: custom-call.6
= control target key start
LH: loop header
LB: loop body
LE: loop exit
PB: predicated region body
PF: predicated region fallthrough
CT: control target
= control target key end

     0   :  { %s6_s0 = inlined_call_operand.vmem [shape: f32[2,32], index: 0, kind: output, shape index: {}]  }

// kernel: semgcn_forward.1
= control target key start
LH: loop header
LB: loop body
LE: loop exit
PB: predicated region body
PF: predicated region fallthrough
CT: control target
= control target key end

     0   :  { %v1607_v3 = vmov 0.0   ;;  %vm1608_vm0 = vmmov 0   ;;  %s1993_s0 = inlined_call_operand.vmem [shape: f32[2,8,64], index: 0, kind: input, shape index: {}]   ;;  %s1994_s1 = inlined_call_operand.vmem [shape: f32[2,1,8], index: 1, kind: input, shape index: {}]   ;;  %s1995_s2 = inlined_call_operand.vmem [shape: f32[2,8,1], index: 2, kind: input, shape index: {}]   ;;  %s1996_s3 = inlined_call_operand.vmem [shape: f32[2,8,1], index: 3, kind: input, shape index: {}]   ;;  %s1997_s4 = inlined_call_operand.vmem [shape: f32[1,8,8], index: 4, kind: input, shape index: {}]   ;;  %s1998_s5 = inlined_call_operand.vmem [shape: f32[304,128], index: 5, kind: input, shape index: {}]   ;;  %s1999_s6 = inlined_call_operand.vmem [shape: f32[8,128], index: 6, kind: input, shape index: {}]   ;;  %s2000_s7 = inlined_call_operand.hbm [shape: f32[2,128], index: 7, kind: output, shape index: {}]  }
   0x1   :  { %v30_v0 = vld [vmem:[%s1998_s5] sm:$0xff]  ;;  %v31_v1 = vld [vmem:[%s1998_s5 + $0x8] sm:$0xff]  ;;  %v32_v2 = vld [vmem:[%s1998_s5 + $0x10] sm:$0xff]  ;;  %1381 = vmatprep.subr.bf16.mxu0 %v1607_v3  ;;  %1389 = vmatprep.mubr.msk.bf16.mxu0 %vm1608_vm0, %v1607_v3 }
   0x2   :  { %v39_v4 = vpack.c.bf16 %v31_v1, %v30_v0  ;;  %v33_v5 = vld [vmem:[%s1998_s5 + $0x18] sm:$0xff]  ;;  %1393 = vmatprep.subr.bf16.mxu1 %v1607_v3  ;;  %1395 = vmatprep.mubr.msk.bf16.mxu1 %vm1608_vm0, %v1607_v3 }
   0x3   :  { %v40_v6 = vpack.c.bf16 %v33_v5, %v32_v2 }
   0x4   :  { %1382 = vmatpush3.bf16.msra.mxu0 %v39_v4 }
   0x5   :  { %12 = vsyncpa [#allocation3], 0  ;;  %1383 = vmatprep.subr.bf16.mxu0 %v1607_v3  ;;  %v34_v7 = vld [vmem:[%s1998_s5 + $0x20] sm:$0xff]  ;;  %v35_v8 = vld [vmem:[%s1998_s5 + $0x28] sm:$0xff]  ;;  %vm48_vm1 = vcmask 523264   ;;  %s1610_s23 = smov 64  }
   0x6   :  { %v41_v9 = vpack.c.bf16 %v35_v8, %v34_v7  ;;  %v36_v10 = vld [vmem:[%s1998_s5 + $0x30] sm:$0xff]  ;;  %v37_v11 = vld [vmem:[%s1998_s5 + $0x38] sm:$0xff]  ;;  %v28_v13 = vld [vmem:[%s1993_s0] sm:$0xff]  ;;  %s1611_s24 = smov 112   ;;  %s1612_s25 = smov 32   ;;  %vm112_vm2 = vcmask 130048  }
   0x7   :  { %v42_v12 = vpack.c.bf16 %v37_v11, %v36_v10  ;;  %v29_v14 = vld [vmem:[%s1993_s0 + $0x8] sm:$0xff]  ;;  %v1301_v16 = vld [vmem:[%s1999_s6] ss:$0 sm:$0xff]  ;;  %s1609_s0 = smov 48   ;;  %s1613_s26 = smov 96   ;;  %v641_v49 = vld [vmem:[%s1998_s5 + $0x50] sm:$0xff] }
   0x8   :  { %1384 = vmatpush3.bf16.msra.mxu0 %v40_v6  ;;  %v1697_v15 = vpack.c.bf16 %v29_v14, %v28_v13  ;;  %s1614_s27 = smov 16   ;;  %s1615_s28 = smov 80   ;;  %v639_v47 = vld [vmem:[%s1998_s5 + $0x40] sm:$0xff]  ;;  %v640_v48 = vld [vmem:[%s1998_s5 + $0x48] sm:$0xff]  ;;  %v642_v51 = vld [vmem:[%s1998_s5 + $0x58] sm:$0xff]  ;;  %vm208_vm3 = vcmask 64512  }
   0x9   :  { %1385 = vmatprep.subr.bf16.mxu0 %v1607_v3  ;;  %v647_v50 = vpack.c.bf16 %v640_v48, %v639_v47  ;;  %v648_v52 = vpack.c.bf16 %v642_v51, %v641_v49  ;;  %v643_v53 = vld [vmem:[%s1998_s5 + $0x60] sm:$0xff]  ;;  %v644_v54 = vld [vmem:[%s1998_s5 + $0x68] sm:$0xff]  ;;  %v645_v56 = vld [vmem:[%s1998_s5 + $0x70] sm:$0xff]  ;;  %vm702_vm4 = vcmask 1043456   ;;  %vm955_vm5 = vcmask 7168  }
   0xa   :  { %v649_v55 = vpack.c.bf16 %v644_v54, %v643_v53  ;;  %v646_v57 = vld [vmem:[%s1998_s5 + $0x78] sm:$0xff]  ;;  %v1303_v59 = vld [vmem:[%s1994_s1] ss:$0 sm:$0xff]  ;;  %vm807_vm8 = vcmask 261120   ;;  %vm1030_vm11 = vcmask 1041409  }
   0xb   :  { %v650_v58 = vpack.c.bf16 %v646_v57, %v645_v56 }
   0xc   :  { %1386 = vmatpush3.bf16.msra.mxu0 %v41_v9  ;;  %v1304_v9 = vld [vmem:[%s1994_s1 + $0x1] ss:$0 sm:$0xff] }
   0xd   :  { %1387 = vmatprep.subr.bf16.mxu0 %v1607_v3 }
  0x10   :  { %1388 = vmatpush3.bf16.msra.mxu0 %v42_v12 }
  0x11   :  { %1405 = vmatprep.subr.bf16.mxu0 %v1607_v3 }
  0x13   :  { %1390 = vmatmul.mubr.msk.bf16.vlgmr.msra.gmra.mrb[0].mxu0 %vm48_vm1, %v1697_v15 }
  0x14   :  { %1407 = vmatprep.mubr.msk.bf16.mxu0 %vm1608_vm0, %v1607_v3 }
  0xe6   :  { %v86_v17 = vpop.f32.mrb[0].mxu0 }
  0xe7   :  { %v87_v18 = vadd.f32 %v1301_v16, %v86_v17  ;;  %v1391_v19 = vpop.f32.mrb[1].mxu0 }
  0xe8   :  { %v89_v20 = vpop.f32.mrb[2].mxu0 }
  0xe9   :  { %v95_v21 = vpack.c.bf16 %v87_v18, %v87_v18  ;;  %v90_v22 = vadd.f32 %v1301_v16, %v89_v20  ;;  %v1392_v23 = vpop.f32.mrb[3].mxu0 }
  0xeb   :  { %233 = vrot.lane.b32.xlu1 %v95_v21, %s1609_s0  ;;  %110 = vrot.lane.b32.xlu0 %v95_v21, %s1610_s23  ;;  %v96_v24 = vpack.c.bf16 %v90_v22, %v90_v22 }
  0xef   :  { %231 = vrot.lane.b32.xlu1 %v95_v21, %s1611_s24  ;;  %160 = vrot.lane.b32.xlu0 %v96_v24, %s1610_s23 }
  0xf3   :  { %357 = vrot.lane.b32.xlu1 %v95_v21, %s1612_s25  ;;  %283 = vrot.lane.b32.xlu0 %v96_v24, %s1609_s0 }
  0xf7   :  { %355 = vrot.lane.b32.xlu1 %v95_v21, %s1613_s26  ;;  %281 = vrot.lane.b32.xlu0 %v96_v24, %s1611_s24 }
  0xfb   :  { %481 = vrot.lane.b32.xlu1 %v95_v21, %s1614_s27  ;;  %407 = vrot.lane.b32.xlu0 %v96_v24, %s1612_s25 }
  0xff   :  { %479 = vrot.lane.b32.xlu1 %v95_v21, %s1615_s28  ;;  %405 = vrot.lane.b32.xlu0 %v96_v24, %s1613_s26 }
 0x103   :  { %529 = vrot.lane.b32.xlu1 %v96_v24, %s1615_s28  ;;  %531 = vrot.lane.b32.xlu0 %v96_v24, %s1614_s27 }
 0x15d   :  { %v234_v25 = vpop.permute.xlu1 %233  ;;  %v111_v26 = vpop.permute.xlu0 %110 }
 0x15e   :  { %v239_v27 = vsel %vm112_vm2, %v234_v25, 0  ;;  %v117_v28 = vsel %vm112_vm2, %v111_v26, 0 }
 0x15f   :  { %1394 = vmatpush3.bf16.xpose.msra.mxu1 %v117_v28  ;;  %1406 = vmatpush3.bf16.xpose.msra.mxu0 %v239_v27 }
 0x160   :  { %1399 = vmatprep.subr.bf16.mxu1 %v1607_v3  ;;  %1417 = vmatprep.subr.bf16.mxu0 %v1607_v3 }
 0x161   :  { %v232_v29 = vpop.permute.xlu1 %231  ;;  %v161_v30 = vpop.permute.xlu0 %160 }
 0x162   :  { %v166_v33 = vsel %vm112_vm2, %v161_v30, 0 }
 0x165   :  { %v358_v31 = vpop.permute.xlu1 %357  ;;  %v284_v32 = vpop.permute.xlu0 %283 }
 0x166   :  { %v363_v34 = vsel %vm112_vm2, %v358_v31, 0  ;;  %1396 = vmatmul.mubr.msk.bf16.vlgmr.msra.gmra.mrb[0].mxu1 %vm112_vm2, %v95_v21  ;;  %1408 = vmatmul.mubr.msk.bf16.vlgmr.msra.gmra.mrb[4].mxu0 %vm112_vm2, %v232_v29  ;;  %v289_v38 = vsel %vm112_vm2, %v284_v32, 0 }
 0x167   :  { %1400 = vmatpush3.bf16.xpose.msra.mxu1 %v166_v33  ;;  %1418 = vmatpush3.bf16.xpose.msra.mxu0 %v363_v34 }
 0x168   :  { %1419 = vmatprep.mubr.msk.bf16.mxu0 %vm1608_vm0, %v1607_v3  ;;  %1401 = vmatprep.mubr.msk.bf16.mxu1 %vm1608_vm0, %v1607_v3 }
 0x169   :  { %v356_v35 = vpop.permute.xlu1 %355  ;;  %v282_v36 = vpop.permute.xlu0 %281  ;;  %1411 = vmatprep.subr.bf16.mxu1 %v1607_v3  ;;  %1429 = vmatprep.subr.bf16.mxu0 %v1607_v3 }
 0x16d   :  { %v482_v37 = vpop.permute.xlu1 %481  ;;  %v408_v40 = vpop.permute.xlu0 %407 }
 0x16e   :  { %v487_v39 = vsel %vm112_vm2, %v482_v37, 0  ;;  %1402 = vmatmul.mubr.msk.bf16.vlgmr.msra.gmra.mrb[4].mxu1 %vm112_vm2, %v96_v24  ;;  %1420 = vmatmul.mubr.msk.bf16.vlgmr.msra.gmra.mrb[8].mxu0 %vm112_vm2, %v356_v35  ;;  %v413_v43 = vsel %vm112_vm2, %v408_v40, 0 }
 0x16f   :  { %1412 = vmatpush3.bf16.xpose.msra.mxu1 %v289_v38  ;;  %1430 = vmatpush3.bf16.xpose.msra.mxu0 %v487_v39 }
 0x170   :  { %1431 = vmatprep.mubr.msk.bf16.mxu0 %vm1608_vm0, %v1607_v3  ;;  %1413 = vmatprep.mubr.msk.bf16.mxu1 %vm1608_vm0, %v1607_v3 }
 0x171   :  { %1423 = vmatprep.subr.bf16.mxu1 %v1607_v3  ;;  %1441 = vmatprep.subr.bf16.mxu0 %v1607_v3  ;;  %v480_v41 = vpop.permute.xlu1 %479  ;;  %v406_v42 = vpop.permute.xlu0 %405 }
 0x175   :  { %v532_v44 = vpop.permute.xlu0 %531  ;;  %v530_v46 = vpop.permute.xlu1 %529 }
 0x176   :  { %1414 = vmatmul.mubr.msk.bf16.vlgmr.msra.gmra.mrb[8].mxu1 %vm112_vm2, %v282_v36  ;;  %1432 = vmatmul.mubr.msk.bf16.vlgmr.msra.gmra.mrb[12].mxu0 %vm112_vm2, %v480_v41  ;;  %v537_v45 = vsel %vm112_vm2, %v532_v44, 0 }
 0x177   :  { %1424 = vmatpush3.bf16.xpose.msra.mxu1 %v413_v43  ;;  %1425 = vmatprep.mubr.msk.bf16.mxu1 %vm1608_vm0, %v1607_v3 }
 0x178   :  { %1435 = vmatprep.subr.bf16.mxu1 %v1607_v3  ;;  %1449 = vmatprep.mubr.msk.bf16.mxu0 %vm1608_vm0, %v1607_v3 }
 0x179   :  { %1442 = vmatpush3.bf16.msra.mxu0 %v647_v50 }
 0x17a   :  { %1443 = vmatprep.subr.bf16.mxu0 %v1607_v3 }
 0x17d   :  { %1444 = vmatpush3.bf16.msra.mxu0 %v648_v52 }
 0x17e   :  { %1426 = vmatmul.mubr.msk.bf16.vlgmr.msra.gmra.mrb[12].mxu1 %vm112_vm2, %v406_v42  ;;  %1445 = vmatprep.subr.bf16.mxu0 %v1607_v3 }
 0x17f   :  { %1436 = vmatpush3.bf16.xpose.msra.mxu1 %v537_v45  ;;  %1437 = vmatprep.mubr.msk.bf16.mxu1 %vm1608_vm0, %v1607_v3 }
 0x180   :  { %1453 = vmatprep.subr.bf16.mxu1 %v1607_v3 }
 0x181   :  { %1446 = vmatpush3.bf16.msra.mxu0 %v649_v55 }
 0x182   :  { %1447 = vmatprep.subr.bf16.mxu0 %v1607_v3 }
 0x185   :  { %1448 = vmatpush3.bf16.msra.mxu0 %v650_v58 }
 0x186   :  { %1438 = vmatmul.mubr.msk.bf16.vlgmr.msra.gmra.mrb[16].mxu1 %vm112_vm2, %v530_v46  ;;  %1465 = vmatprep.subr.bf16.mxu0 %v1607_v3  ;;  %v1616_v46 = vmov 0  }
 0x187   :  { %1455 = vmatprep.mubr.msk.bf16.mxu1 %vm1608_vm0, %v1607_v3  ;;  %1539 = vset.pattern.permute.xlu1 %v1616_v46 }
 0x188   :  { %1450 = vmatmul.mubr.msk.bf16.vlgmr.msra.gmra.mrb[16].mxu0 %vm48_vm1, %v1697_v15  ;;  %1540 = vset.pattern.permute.xlu0 %v1616_v46 }
 0x189   :  { %1469 = vmatprep.mubr.msk.bf16.mxu0 %vm1608_vm0, %v1607_v3 }
 0x239   :  { %v153_v60 = vpop.f32.mrb[0].mxu1  ;;  %v275_v61 = vpop.f32.mrb[4].mxu0 }
 0x23a   :  { %v154_v62 = vadd.f32 %v1303_v59, %v153_v60  ;;  %v276_v63 = vadd.f32 %v1303_v59, %v275_v61  ;;  %v1397_v0 = vpop.f32.mrb[1].mxu1  ;;  %v1409_v1 = vpop.f32.mrb[5].mxu0 }
 0x23b   :  { %v156_v2 = vpop.f32.mrb[2].mxu1  ;;  %v278_v4 = vpop.f32.mrb[6].mxu0 }
 0x23c   :  { %v1398_v5 = vpop.f32.mrb[3].mxu1  ;;  %v1410_v6 = vpop.f32.mrb[7].mxu0  ;;  %v209_v7 = vsel %vm208_vm3, %v154_v62, -inf  ;;  %v331_v8 = vsel %vm208_vm3, %v276_v63, -inf }
 0x23d   :  { %210 = vmax.xlane.f32.xlu0 %v209_v7  ;;  %332 = vmax.xlane.f32.xlu1 %v331_v8 }
 0x241   :  { %v202_v10 = vpop.f32.mrb[4].mxu1  ;;  %v399_v11 = vpop.f32.mrb[8].mxu0 }
 0x242   :  { %v203_v12 = vadd.f32 %v1304_v9, %v202_v10  ;;  %v400_v13 = vadd.f32 %v1303_v59, %v399_v11  ;;  %v1403_v14 = vpop.f32.mrb[5].mxu1  ;;  %v1421_v15 = vpop.f32.mrb[9].mxu0 }
 0x243   :  { %v205_v16 = vpop.f32.mrb[6].mxu1  ;;  %v402_v17 = vpop.f32.mrb[10].mxu0 }
 0x244   :  { %v1404_v18 = vpop.f32.mrb[7].mxu1  ;;  %v1422_v19 = vpop.f32.mrb[11].mxu0  ;;  %v212_v20 = vsel %vm208_vm3, %v203_v12, -inf  ;;  %v455_v21 = vsel %vm208_vm3, %v400_v13, -inf }
 0x245   :  { %213 = vmax.xlane.f32.xlu1 %v212_v20  ;;  %456 = vmax.xlane.f32.xlu0 %v455_v21 }
 0x249   :  { %v325_v22 = vpop.f32.mrb[8].mxu1  ;;  %v523_v23 = vpop.f32.mrb[12].mxu0 }
 0x24a   :  { %v524_v24 = vadd.f32 %v1303_v59, %v523_v23  ;;  %v1415_v25 = vpop.f32.mrb[9].mxu1  ;;  %v1433_v26 = vpop.f32.mrb[13].mxu0  ;;  %v326_v29 = vadd.f32 %v1304_v9, %v325_v22 }
 0x24b   :  { %v328_v27 = vpop.f32.mrb[10].mxu1  ;;  %v526_v28 = vpop.f32.mrb[14].mxu0 }
 0x24c   :  { %v1416_v30 = vpop.f32.mrb[11].mxu1  ;;  %v1434_v31 = vpop.f32.mrb[15].mxu0  ;;  %v579_v32 = vsel %vm208_vm3, %v524_v24, -inf  ;;  %v334_v33 = vsel %vm208_vm3, %v326_v29, -inf }
 0x24d   :  { %580 = vmax.xlane.f32.xlu0 %v579_v32 }
 0x251   :  { %v449_v34 = vpop.f32.mrb[12].mxu1  ;;  %335 = vmax.xlane.f32.xlu0 %v334_v33 }
 0x252   :  { %v450_v35 = vadd.f32 %v1304_v9, %v449_v34  ;;  %v1427_v36 = vpop.f32.mrb[13].mxu1 }
 0x253   :  { %v452_v37 = vpop.f32.mrb[14].mxu1 }
 0x254   :  { %v1428_v38 = vpop.f32.mrb[15].mxu1  ;;  %v458_v39 = vsel %vm208_vm3, %v450_v35, -inf }
 0x255   :  { %459 = vmax.xlane.f32.xlu1 %v458_v39 }
 0x259   :  { %v573_v40 = vpop.f32.mrb[16].mxu1 }
 0x25a   :  { %v574_v41 = vadd.f32 %v1304_v9, %v573_v40  ;;  %v1439_v42 = vpop.f32.mrb[17].mxu1 }
 0x25b   :  { %v576_v43 = vpop.f32.mrb[18].mxu1  ;;  %v685_v25 = vpop.f32.mrb[16].mxu0 }
 0x25c   :  { %v1440_v44 = vpop.f32.mrb[19].mxu1  ;;  %v582_v45 = vsel %vm208_vm3, %v574_v41, -inf  ;;  %v692_v26 = vpack.c.bf16 %v685_v25, %v685_v25  ;;  %v1451_v27 = vpop.f32.mrb[17].mxu0 }
 0x25d   :  { %583 = vmax.xlane.f32.xlu0 %v582_v45  ;;  %v688_v30 = vpop.f32.mrb[18].mxu0 }
 0x25e   :  { %v704_v28 = vsel %vm702_vm4, %v692_v26, 0  ;;  %v1452_v31 = vpop.f32.mrb[19].mxu0 }
 0x25f   :  { %1454 = vmatpush3.bf16.msra.mxu1 %v704_v28 }
 0x260   :  { %1459 = vmatprep.subr.bf16.mxu1 %v1607_v3 }
 0x2ca   :  { %v211_v47 = vpop.xlane.xlu0 %210  ;;  %v333_v48 = vpop.xlane.xlu1 %332 }
 0x2cb   :  { %v215_v49 = vsub.f32 %v154_v62, %v211_v47  ;;  %v337_v50 = vsub.f32 %v276_v63, %v333_v48  ;;  %v605_v47 = vld [vmem:[%s1997_s4] sm:$0xff] }
 0x2cd   :  { %v217_v51 = vmul.f32 1.442695, %v215_v49  ;;  %v339_v52 = vmul.f32 1.442695, %v337_v50  ;;  %v606_v50 = vsub.f32 1.0, %v605_v47 }
 0x2cf   :  { %1541 = vpow2.f32 %v217_v51 }
 0x2d0   :  { %1543 = vpow2.f32 %v339_v52 }
 0x2d2   :  { %v214_v53 = vpop.xlane.xlu1 %213  ;;  %v457_v54 = vpop.xlane.xlu0 %456 }
 0x2d3   :  { %v216_v55 = vsub.f32 %v203_v12, %v214_v53  ;;  %v461_v56 = vsub.f32 %v400_v13, %v457_v54  ;;  %v953_v54 = vld [vmem:[%s1996_s3] sm:$0xff] }
 0x2d5   :  { %v463_v57 = vmul.f32 1.442695, %v461_v56  ;;  %v219_v58 = vmul.f32 1.442695, %v216_v55 }
 0x2d7   :  { %1545 = vpow2.f32 %v463_v57 }
 0x2d8   :  { %1547 = vpow2.f32 %v219_v58  ;;  %v693_v58 = vpack.c.bf16 %v688_v30, %v688_v30 }
 0x2d9   :  { %v1793_v59 = vpop.eup %1541 }
 0x2da   :  { %v1795_v60 = vpop.eup %1543  ;;  %v581_v61 = vpop.xlane.xlu0 %580  ;;  %v221_v62 = vsel %vm208_vm3, %v1793_v59, 0.0 }
 0x2db   :  { %v585_v63 = vsub.f32 %v524_v24, %v581_v61  ;;  %222 = vadd.xlane.f32.xlu1 %v221_v62  ;;  %v343_v0 = vsel %vm208_vm3, %v1795_v60, 0.0  ;;  %v611_v24 = vld [vmem:[%s1995_s2] sm:$0xff] }
 0x2dc   :  { %344 = vadd.xlane.f32.xlu0 %v343_v0 }
 0x2dd   :  { %v587_v1 = vmul.f32 1.442695, %v585_v63 }
 0x2de   :  { %v336_v2 = vpop.xlane.xlu0 %335 }
 0x2df   :  { %1549 = vpow2.f32 %v587_v1  ;;  %v338_v4 = vsub.f32 %v326_v29, %v336_v2  ;;  %v612_v29 = vld [vmem:[%s1995_s2 + $0x8] sm:$0xff]  ;;  %v750_v2 = vsel %vm702_vm4, %v693_v58, 0 }
 0x2e1   :  { %v341_v5 = vmul.f32 1.442695, %v338_v4  ;;  %v1546_v6 = vpop.eup %1545 }
 0x2e2   :  { %v460_v7 = vpop.xlane.xlu1 %459  ;;  %v467_v9 = vsel %vm208_vm3, %v1546_v6, 0.0  ;;  %v1802_v10 = vpop.eup %1547 }
 0x2e3   :  { %1551 = vpow2.f32 %v341_v5  ;;  %v462_v8 = vsub.f32 %v450_v35, %v460_v7  ;;  %468 = vadd.xlane.f32.xlu1 %v467_v9  ;;  %v224_v12 = vsel %vm208_vm3, %v1802_v10, 0.0 }
 0x2e5   :  { %v465_v11 = vmul.f32 1.442695, %v462_v8 }
 0x2e7   :  { %1553 = vpow2.f32 %v465_v11  ;;  %225 = vadd.xlane.f32.xlu1 %v224_v12 }
 0x2e9   :  { %v1550_v13 = vpop.eup %1549 }
 0x2ea   :  { %v584_v14 = vpop.xlane.xlu0 %583  ;;  %v591_v15 = vsel %vm208_vm3, %v1550_v13, 0.0 }
 0x2eb   :  { %v586_v16 = vsub.f32 %v574_v41, %v584_v14  ;;  %592 = vadd.xlane.f32.xlu0 %v591_v15  ;;  %v954_v15 = vld [vmem:[%s1996_s3 + $0x8] sm:$0xff] }
 0x2ed   :  { %v1807_v17 = vpop.eup %1551  ;;  %v589_v18 = vmul.f32 1.442695, %v586_v16 }
 0x2ee   :  { %v346_v19 = vsel %vm208_vm3, %v1807_v17, 0.0 }
 0x2ef   :  { %1555 = vpow2.f32 %v589_v18  ;;  %347 = vadd.xlane.f32.xlu0 %v346_v19 }
 0x2f1   :  { %v1811_v20 = vpop.eup %1553 }
 0x2f2   :  { %v470_v21 = vsel %vm208_vm3, %v1811_v20, 0.0 }
 0x2f3   :  { %471 = vadd.xlane.f32.xlu1 %v470_v21 }
 0x2f9   :  { %v1815_v22 = vpop.eup %1555 }
 0x2fa   :  { %v594_v23 = vsel %vm208_vm3, %v1815_v22, 0.0 }
 0x2fb   :  { %595 = vadd.xlane.f32.xlu0 %v594_v23 }
 0x304   :  { %615 = vperm.xlu1 %1539, %v611_v24  }
 0x311   :  { %620 = vperm.xlu0 %1540, %v612_v29  }
 0x368   :  { %v223_v32 = vpop.xlane.xlu1 %222 }
 0x369   :  { %v345_v33 = vpop.xlane.xlu0 %344  ;;  %1557 = vrcp.f32 %v223_v32 }
 0x36a   :  { %1559 = vrcp.f32 %v345_v33 }
 0x370   :  { %v469_v34 = vpop.xlane.xlu1 %468 }
 0x371   :  { %1561 = vrcp.f32 %v469_v34 }
 0x373   :  { %v1558_v36 = vpop.eup %1557 }
 0x374   :  { %v1560_v37 = vpop.eup %1559  ;;  %v226_v38 = vpop.xlane.xlu1 %225  ;;  %v229_v40 = vmul.f32 %v1558_v36, %v1793_v59  ;;  %v956_v59 = vsel %vm955_vm5, %v953_v54, 0.0  ;;  %v801_v36 = vld [vmem:[%s1998_s5 + $0x88] sm:$0xff] }
 0x375   :  { %v351_v41 = vmul.f32 %v1560_v37, %v1795_v60  ;;  %v957_v1 = vrot.slane %v956_v59, 4 }
 0x377   :  { %v353_v45 = vadd.f32 %v351_v41, %v229_v40  ;;  %v958_v9 = vadd.f32 %v957_v1, %v956_v59 }
 0x378   :  { %v593_v35 = vpop.xlane.xlu0 %592 }
 0x379   :  { %1563 = vrcp.f32 %v593_v35  ;;  %v959_v14 = vrot.slane %v958_v9, 2  ;;  %v800_v35 = vld [vmem:[%s1998_s5 + $0x80] sm:$0xff] }
 0x37a   :  { %v805_v37 = vpack.c.bf16 %v801_v36, %v800_v35 }
 0x37b   :  { %v1562_v39 = vpop.eup %1561  ;;  %v960_v19 = vadd.f32 %v959_v14, %v958_v9  ;;  %v1016_v14 = vld [vmem:[%s1998_s5 + $0xb8] sm:$0xff] }
 0x37c   :  { %v348_v42 = vpop.xlane.xlu0 %347  ;;  %v475_v44 = vmul.f32 %v1562_v39, %v1546_v6  ;;  %1466 = vmatpush3.bf16.msra.mxu0 %v805_v37  ;;  %v803_v39 = vld [vmem:[%s1998_s5 + $0x98] sm:$0xff] }
 0x37d   :  { %1565 = vrcp.f32 %v348_v42  ;;  %v961_v25 = vrot.slane %v960_v19, 1  ;;  %1467 = vmatprep.subr.bf16.mxu0 %v1607_v3 }
 0x37e   :  { %1567 = vrcp.f32 %v226_v38  ;;  %v477_v48 = vadd.f32 %v475_v44, %v353_v45  ;;  %v802_v38 = vld [vmem:[%s1998_s5 + $0x90] sm:$0xff] }
 0x37f   :  { %v962_v28 = vadd.f32 %v961_v25, %v960_v19  ;;  %v806_v40 = vpack.c.bf16 %v803_v39, %v802_v38 }
 0x380   :  { %v472_v43 = vpop.xlane.xlu1 %471 }
 0x381   :  { %1569 = vrcp.f32 %v472_v43  ;;  %v970_v30 = vmax.f32 %v962_v28, 1.0  ;;  %1468 = vmatpush3.bf16.msra.mxu0 %v806_v40 }
 0x382   :  { %1479 = vmatprep.subr.bf16.mxu0 %v1607_v3 }
 0x383   :  { %v1564_v46 = vpop.eup %1563 }
 0x384   :  { %v599_v49 = vmul.f32 %v1564_v46, %v1550_v13  ;;  %v616_v57 = vpop.permute.xlu1 %615 }
 0x386   :  { %v601_v51 = vadd.f32 %v599_v49, %v477_v48  ;;  %v1314_v49 = vld [vmem:[%s1999_s6 + $0x1] ss:$0 sm:$0xff] }
 0x387   :  { %v1566_v56 = vpop.eup %1565 }
 0x388   :  { %v596_v52 = vpop.xlane.xlu0 %595  ;;  %v603_v53 = vmul.f32 0.25, %v601_v51  ;;  %v1568_v60 = vpop.eup %1567  ;;  %v352_v63 = vmul.f32 %v1566_v56, %v1807_v17  ;;  %v963_v17 = vsel %vm955_vm5, %v954_v15, 0.0 }
 0x389   :  { %1571 = vrcp.f32 %v596_v52  ;;  %v230_v4 = vmul.f32 %v1568_v60, %v1802_v10  ;;  %v964_v21 = vrot.slane %v963_v17, 4 }
 0x38a   :  { %v607_v55 = vmul.f32 %v606_v50, %v603_v53 }
 0x38b   :  { %v1570_v62 = vpop.eup %1569  ;;  %v354_v8 = vadd.f32 %v352_v63, %v230_v4  ;;  %v965_v26 = vadd.f32 %v964_v21, %v963_v17  ;;  %v1077_v17 = vld [vmem:[%s1998_s5 + $0xc8] sm:$0xff] }
 0x38c   :  { %v609_v61 = vadd.f32 %v607_v55, %v605_v47  ;;  %v476_v7 = vmul.f32 %v1570_v62, %v1811_v20 }
 0x38d   :  { %v966_v29 = vrot.slane %v965_v26, 2 }
 0x38e   :  { %v623_v0 = vmul.f32 %v616_v57, %v609_v61  ;;  %v478_v12 = vadd.f32 %v476_v7, %v354_v8 }
 0x38f   :  { %v967_v31 = vadd.f32 %v966_v29, %v965_v26 }
 0x390   :  { %v1839_v5 = vpack.c.bf16 %v623_v0, %v623_v0  ;;  %v625_v6 = vsel %vm208_vm3, %v623_v0, 0.0  ;;  %v621_v20 = vpop.permute.xlu0 %620 }
 0x391   :  { %626 = vadd.xlane.f32.xlu1 %v625_v6  ;;  %v968_v32 = vrot.slane %v967_v31, 1 }
 0x392   :  { %1456 = vmatmul.mubr.msk.bf16.vlgmr.msra.gmra.mrb[20].mxu1 %vm208_vm3, %v1839_v5 }
 0x393   :  { %v1572_v11 = vpop.eup %1571  ;;  %1460 = vmatpush3.bf16.msra.mxu1 %v750_v2  ;;  %1461 = vmatprep.mubr.msk.bf16.mxu1 %vm1608_vm0, %v1607_v3  ;;  %v969_v33 = vadd.f32 %v968_v32, %v967_v31 }
 0x394   :  { %v600_v10 = vmul.f32 %v1572_v11, %v1815_v22  ;;  %1473 = vmatprep.subr.bf16.mxu1 %v1607_v3 }
 0x395   :  { %v971_v34 = vmax.f32 %v969_v33, 1.0 }
 0x396   :  { %v602_v13 = vadd.f32 %v600_v10, %v478_v12  ;;  %v1013_v12 = vld [vmem:[%s1998_s5 + $0xa0] sm:$0xff]  ;;  %v1014_v10 = vld [vmem:[%s1998_s5 + $0xa8] sm:$0xff] }
 0x398   :  { %v604_v16 = vmul.f32 0.25, %v602_v13  ;;  %v1019_v13 = vpack.c.bf16 %v1014_v10, %v1013_v12  ;;  %v1134_v12 = vld [vmem:[%s1998_s5 + $0xf8] sm:$0xff] }
 0x39a   :  { %v608_v18 = vmul.f32 %v606_v50, %v604_v16  ;;  %v1076_v16 = vld [vmem:[%s1998_s5 + $0xc0] sm:$0xff] }
 0x39c   :  { %v610_v23 = vadd.f32 %v608_v18, %v605_v47  ;;  %v1081_v18 = vpack.c.bf16 %v1077_v17, %v1076_v16 }
 0x39e   :  { %v624_v24 = vmul.f32 %v621_v20, %v610_v23  ;;  %v1318_v20 = vld [vmem:[%s1999_s6 + $0x2] ss:$0 sm:$0xff] }
 0x3a0   :  { %v1853_v22 = vpack.c.bf16 %v624_v24, %v624_v24  ;;  %v628_v27 = vsel %vm208_vm3, %v624_v24, 0.0 }
 0x3a1   :  { %629 = vadd.xlane.f32.xlu0 %v628_v27 }
 0x3a2   :  { %974 = vperm.xlu1 %1539, %v953_v54   ;;  %1462 = vmatmul.mubr.msk.bf16.vlgmr.msra.gmra.mrb[24].mxu1 %vm208_vm3, %v1853_v22 }
 0x3a3   :  { %1475 = vmatprep.mubr.msk.bf16.mxu1 %vm1608_vm0, %v1607_v3 }
 0x3a6   :  { %979 = vperm.xlu1 %1539, %v954_v15  }
 0x3aa   :  { %1000 = vperm.xlu1 %1539, %v970_v30  }
 0x3b7   :  { %1005 = vperm.xlu0 %1540, %v971_v34  }
 0x41e   :  { %v627_v41 = vpop.xlane.xlu1 %626 }
 0x41f   :  { %v631_v42 = vadd.f32 1.0, %v627_v41 }
 0x421   :  { %1573 = vrcp.f32 %v631_v42 }
 0x422   :  { %v975_v19 = vpop.permute.xlu1 %974 }
 0x426   :  { %v980_v23 = vpop.permute.xlu1 %979 }
 0x42a   :  { %v1001_v38 = vpop.permute.xlu1 %1000 }
 0x42b   :  { %v1574_v51 = vpop.eup %1573 }
 0x42e   :  { %v630_v44 = vpop.xlane.xlu0 %629 }
 0x42f   :  { %v632_v48 = vadd.f32 1.0, %v630_v44 }
 0x431   :  { %1575 = vrcp.f32 %v632_v48 }
 0x432   :  { %1577 = vrcp.f32 %v1001_v38 }
 0x436   :  { %v1006_v42 = vpop.permute.xlu0 %1005 }
 0x437   :  { %1579 = vrcp.f32 %v1006_v42  ;;  %v1328_v42 = vld [vmem:[%s1999_s6 + $0x6] ss:$0 sm:$0xff] }
 0x43b   :  { %v1576_v56 = vpop.eup %1575 }
 0x465   :  { %v740_v43 = vpop.f32.mrb[20].mxu1 }
 0x466   :  { %v1457_v45 = vpop.f32.mrb[21].mxu1  ;;  %v741_v50 = vadd.f32 %v1314_v49, %v740_v43 }
 0x467   :  { %v743_v46 = vpop.f32.mrb[22].mxu1 }
 0x468   :  { %v1458_v47 = vpop.f32.mrb[23].mxu1  ;;  %v792_v52 = vmul.f32 %v1574_v51, %v741_v50 }
 0x46a   :  { %v796_v58 = vmul.f32 0.1, %v792_v52  ;;  %vm794_vm6 = vcmp.ge.f32.partialorder %v792_v52, 0.0 }
 0x46c   :  { %v798_v62 = vsel %vm794_vm6, %v792_v52, %v796_v58 }
 0x475   :  { %v786_v53 = vpop.f32.mrb[24].mxu1 }
 0x476   :  { %v787_v54 = vadd.f32 %v1314_v49, %v786_v53  ;;  %v1463_v55 = vpop.f32.mrb[25].mxu1 }
 0x477   :  { %v789_v57 = vpop.f32.mrb[26].mxu1  ;;  %v1578_v55 = vpop.eup %1577 }
 0x478   :  { %v793_v59 = vmul.f32 %v1576_v56, %v787_v54  ;;  %v1464_v60 = vpop.f32.mrb[27].mxu1  ;;  %v1580_v58 = vpop.eup %1579 }
 0x47a   :  { %vm795_vm7 = vcmp.ge.f32.partialorder %v793_v59, 0.0  ;;  %v797_v61 = vmul.f32 0.1, %v793_v59 }
 0x47c   :  { %v799_v63 = vsel %vm795_vm7, %v793_v59, %v797_v61 }
 0x47d   :  { %v804_v0 = vpack.c.bf16 %v799_v63, %v798_v62  ;;  %v1131_v62 = vld [vmem:[%s1998_s5 + $0xe0] sm:$0xff]  ;;  %v1132_v63 = vld [vmem:[%s1998_s5 + $0xe8] sm:$0xff] }
 0x47f   :  { %1470 = vmatmul.mubr.msk.bf16.vlgmr.msra.gmra.mrb[20].mxu0 %vm807_vm8, %v804_v0 }
 0x480   :  { %1481 = vmatprep.mubr.msk.bf16.mxu0 %vm1608_vm0, %v1607_v3 }
 0x552   :  { %v845_v1 = vpop.f32.mrb[20].mxu0 }
 0x553   :  { %v852_v2 = vpack.c.bf16 %v845_v1, %v845_v1  ;;  %v1471_v4 = vpop.f32.mrb[21].mxu0 }
 0x554   :  { %v848_v6 = vpop.f32.mrb[22].mxu0  ;;  %v1135_v4 = vpack.c.bf16 %v1132_v63, %v1131_v62 }
 0x555   :  { %v860_v7 = vsel %vm702_vm4, %v852_v2, 0  ;;  %v853_v8 = vpack.c.bf16 %v848_v6, %v848_v6  ;;  %v1472_v9 = vpop.f32.mrb[23].mxu0 }
 0x556   :  { %1474 = vmatpush3.bf16.msra.mxu1 %v860_v7  ;;  %v1078_v7 = vld [vmem:[%s1998_s5 + $0xd0] sm:$0xff] }
 0x557   :  { %v903_v11 = vsel %vm702_vm4, %v853_v8, 0  ;;  %1485 = vmatprep.subr.bf16.mxu1 %v1607_v3  ;;  %v1079_v8 = vld [vmem:[%s1998_s5 + $0xd8] sm:$0xff]  ;;  %v1133_v9 = vld [vmem:[%s1998_s5 + $0xf0] sm:$0xff] }
 0x558   :  { %1480 = vmatpush3.bf16.msra.mxu0 %v903_v11  ;;  %v1082_v11 = vpack.c.bf16 %v1079_v8, %v1078_v7  ;;  %v1136_v10 = vpack.c.bf16 %v1134_v12, %v1133_v9 }
 0x559   :  { %1476 = vmatmul.mubr.msk.bf16.vlgmr.msra.gmra.mrb[28].mxu1 %vm208_vm3, %v1839_v5  ;;  %1493 = vmatprep.subr.bf16.mxu0 %v1607_v3  ;;  %v1015_v5 = vld [vmem:[%s1998_s5 + $0xb0] sm:$0xff] }
 0x55a   :  { %1489 = vmatprep.mubr.msk.bf16.mxu1 %vm1608_vm0, %v1607_v3  ;;  %1486 = vmatpush3.bf16.msra.mxu1 %v1019_v13  ;;  %v1020_v15 = vpack.c.bf16 %v1016_v14, %v1015_v5  ;;  %v1321_v5 = vld [vmem:[%s1999_s6 + $0x3] ss:$0 sm:$0xff]  ;;  %v1183_v14 = vld [vmem:[%s1998_s5 + $0x108] sm:$0xff] }
 0x55b   :  { %1482 = vmatmul.mubr.msk.bf16.vlgmr.msra.gmra.mrb[24].mxu0 %vm208_vm3, %v1853_v22  ;;  %1487 = vmatprep.subr.bf16.mxu1 %v1607_v3  ;;  %v1182_v13 = vld [vmem:[%s1998_s5 + $0x100] sm:$0xff] }
 0x55c   :  { %1497 = vmatprep.mubr.msk.bf16.mxu0 %vm1608_vm0, %v1607_v3  ;;  %1494 = vmatpush3.bf16.msra.mxu0 %v1081_v18 }
 0x55d   :  { %1495 = vmatprep.subr.bf16.mxu0 %v1607_v3 }
 0x55e   :  { %1488 = vmatpush3.bf16.msra.mxu1 %v1020_v15 }
 0x55f   :  { %1501 = vmatprep.subr.bf16.mxu1 %v1607_v3 }
 0x560   :  { %1496 = vmatpush3.bf16.msra.mxu0 %v1082_v11 }
 0x561   :  { %1509 = vmatprep.subr.bf16.mxu0 %v1607_v3 }
 0x62c   :  { %v896_v21 = vpop.f32.mrb[28].mxu1 }
 0x62d   :  { %v897_v24 = vadd.f32 %v1318_v20, %v896_v21  ;;  %v1477_v25 = vpop.f32.mrb[29].mxu1 }
 0x62e   :  { %v899_v26 = vpop.f32.mrb[30].mxu1  ;;  %v939_v22 = vpop.f32.mrb[24].mxu0 }
 0x62f   :  { %v945_v27 = vmul.f32 %v1574_v51, %v897_v24  ;;  %v940_v28 = vadd.f32 %v1318_v20, %v939_v22  ;;  %v1478_v29 = vpop.f32.mrb[31].mxu1  ;;  %v1483_v30 = vpop.f32.mrb[25].mxu0 }
 0x630   :  { %v942_v31 = vpop.f32.mrb[26].mxu0  ;;  %v1231_v29 = vld [vmem:[%s1998_s5 + $0x110] sm:$0xff]  ;;  %v1232_v30 = vld [vmem:[%s1998_s5 + $0x118] sm:$0xff] }
 0x631   :  { %vm947_vm9 = vcmp.ge.f32.partialorder %v945_v27, 0.0  ;;  %v949_v32 = vmul.f32 0.1, %v945_v27  ;;  %v946_v33 = vmul.f32 %v1576_v56, %v940_v28  ;;  %v1484_v34 = vpop.f32.mrb[27].mxu0  ;;  %v1236_v31 = vpack.c.bf16 %v1232_v30, %v1231_v29 }
 0x633   :  { %v951_v35 = vsel %vm947_vm9, %v945_v27, %v949_v32  ;;  %vm948_vm10 = vcmp.ge.f32.partialorder %v946_v33, 0.0  ;;  %v950_v36 = vmul.f32 0.1, %v946_v33  ;;  %v1233_v32 = vld [vmem:[%s1998_s5 + $0x120] sm:$0xff] }
 0x634   :  { %v982_v37 = vmul.f32 %v975_v19, %v951_v35  ;;  %v1185_v19 = vpack.c.bf16 %v1183_v14, %v1182_v13  ;;  %v1324_v35 = vld [vmem:[%s1999_s6 + $0x5] ss:$0 sm:$0xff] }
 0x635   :  { %v952_v39 = vsel %vm948_vm10, %v946_v33, %v950_v36  ;;  %v1234_v33 = vld [vmem:[%s1998_s5 + $0x128] sm:$0xff]  ;;  %s1617_s5 = smov [#allocation2]  }
 0x636   :  { %v984_v40 = vsel %vm807_vm8, %v982_v37, 0.0  ;;  %v983_v41 = vmul.f32 %v980_v23, %v952_v39  ;;  %v1325_v23 = vld [vmem:[%s1999_s6 + $0x4] ss:$0 sm:$0xff]  ;;  %v1237_v34 = vpack.c.bf16 %v1234_v33, %v1233_v32  ;;  %s1293_s3 = sshll.u32 %s1617_s5, 4  ;;  %s1294_s3 = int_to_ptr.vmem [resolvable:$true] %s1293_s3 }
 0x637   :  { %v985_v43 = vrot.slane %v984_v40, 4  ;;  %s1583_s9 = scalar_lea.vmem %s1294_s3, 32  ;;  %p1588_p1 = scmp.lt.s32.totalorder %s1294_s3, %s1294_s3 }
 0x638   :  { %v991_v44 = vsel %vm807_vm8, %v983_v41, 0.0  ;;  %p1584_p0 = scmp.ne.s32.totalorder %s1294_s3, %s1583_s9  ;;  %p1589_p2 = scmp.lt.s32.totalorder %s1583_s9, %s1583_s9 }
 0x639   :  { %v986_v45 = vadd.f32 %v985_v43, %v984_v40  ;;  %v992_v46 = vrot.slane %v991_v44, 4 }
 0x63a   :  { %p1590_p3 = por %p1589_p2, %p1588_p1 }
 0x63b   :  { %v987_v47 = vrot.slane %v986_v45, 2  ;;  %v993_v48 = vadd.f32 %v992_v46, %v991_v44 }
 0x63c   :  { %p1591_p4 = pnand %p1590_p3, %p1584_p0 }
 0x63d   :  { %v988_v49 = vadd.f32 %v987_v47, %v986_v45  ;;  %v994_v50 = vrot.slane %v993_v48, 2 }
 0x63f   :  { %v989_v51 = vrot.slane %v988_v49, 1  ;;  %v995_v52 = vadd.f32 %v994_v50, %v993_v48 }
 0x641   :  { %v990_v53 = vadd.f32 %v989_v51, %v988_v49  ;;  %v996_v54 = vrot.slane %v995_v52, 1 }
 0x643   :  { %v1009_v56 = vmul.f32 %v1578_v55, %v990_v53  ;;  %v997_v57 = vadd.f32 %v996_v54, %v995_v52 }
 0x645   :  { %v1011_v59 = vmul.f32 %v1580_v58, %v997_v57  ;;  %v1017_v60 = vpack.c.bf16 %v1009_v56, %v1009_v56 }
 0x647   :  { %v1018_v61 = vpack.c.bf16 %v1011_v59, %v1011_v59  ;;  %v1028_v0 = vunpack.c.l.b16 %v1017_v60 }
 0x649   :  { %v1029_v1 = vunpack.c.l.b16 %v1018_v61 }
 0x64b   :  { %v1031_v2 = vsel %vm1030_vm11, %v1029_v1, %v1028_v0 }
 0x64c   :  { %v1032_v6 = vpack.c.b16 %v1031_v2, %v1031_v2 }
 0x64e   :  { %1490 = vmatmul.mubr.msk.bf16.vlgmr.msra.gmra.mrb[32].mxu1 %vm807_vm8, %v1032_v6 }
 0x64f   :  { %1502 = vmatpush3.bf16.msra.mxu1 %v1135_v4  ;;  %1505 = vmatprep.mubr.msk.bf16.mxu1 %vm1608_vm0, %v1607_v3 }
 0x650   :  { %1503 = vmatprep.subr.bf16.mxu1 %v1607_v3 }
 0x653   :  { %1504 = vmatpush3.bf16.msra.mxu1 %v1136_v10 }
 0x654   :  { %1515 = vmatprep.subr.bf16.mxu1 %v1607_v3 }
 0x721   :  { %v1070_v15 = vpop.f32.mrb[32].mxu1 }
 0x722   :  { %v1071_v16 = vadd.f32 %v1321_v5, %v1070_v15  ;;  %v1491_v17 = vpop.f32.mrb[33].mxu1 }
 0x723   :  { %v1073_v18 = vpop.f32.mrb[34].mxu1 }
 0x724   :  { %v1080_v20 = vpack.c.bf16 %v1071_v16, %v1071_v16  ;;  %v1492_v21 = vpop.f32.mrb[35].mxu1 }
 0x726   :  { %1498 = vmatmul.mubr.msk.bf16.vlgmr.msra.gmra.mrb[28].mxu0 %vm807_vm8, %v1080_v20  ;;  %1506 = vmatmul.mubr.msk.bf16.vlgmr.msra.gmra.mrb[36].mxu1 %vm807_vm8, %v1080_v20 }
 0x727   :  { %1510 = vmatpush3.bf16.msra.mxu0 %v1185_v19  ;;  %1511 = vmatprep.mubr.msk.bf16.mxu0 %vm1608_vm0, %v1607_v3 }
 0x728   :  { %1519 = vmatprep.mubr.msk.bf16.mxu1 %vm1608_vm0, %v1607_v3  ;;  %1516 = vmatpush3.bf16.msra.mxu1 %v1236_v31 }
 0x729   :  { %1517 = vmatprep.subr.bf16.mxu1 %v1607_v3 }
 0x72c   :  { %1518 = vmatpush3.bf16.msra.mxu1 %v1237_v34 }
 0x7f9   :  { %v1176_v24 = vpop.f32.mrb[36].mxu1 }
 0x7fa   :  { %v1177_v25 = vadd.f32 %v1325_v23, %v1176_v24  ;;  %v1507_v26 = vpop.f32.mrb[37].mxu1 }
 0x7fb   :  { %v1179_v22 = vpop.f32.mrb[38].mxu1 }
 0x7fc   :  { %v1184_v27 = vpack.c.bf16 %v1177_v25, %v1177_v25  ;;  %v1508_v28 = vpop.f32.mrb[39].mxu1 }
 0x7fe   :  { %1512 = vmatmul.mubr.msk.bf16.vlgmr.msra.gmra.mrb[28].mxu0 %vm112_vm2, %v1184_v27 }
 0x8d1   :  { %v1223_v36 = vpop.f32.mrb[28].mxu0 }
 0x8d2   :  { %v1523_v37 = vadd.f32 %v1324_v35, %v1223_v36  ;;  %v1513_v38 = vpop.f32.mrb[29].mxu0 }
 0x8d3   :  { %v1226_v39 = vpop.f32.mrb[30].mxu0 }
 0x8d4   :  { %1581 = vtanh.f32 %v1523_v37  ;;  %v1514_v3 = vpop.f32.mrb[31].mxu0 }
 0x8de   :  { %v1582_v40 = vpop.eup %1581 }
 0x8df   :  { %v1235_v41 = vpack.c.bf16 %v1582_v40, %v1582_v40 }
 0x8e1   :  { %1520 = vmatmul.mubr.msk.bf16.vlgmr.msra.gmra.mrb[40].mxu1 %vm807_vm8, %v1235_v41 }
 0x9b4   :  { %v1280_v43 = vpop.f32.mrb[40].mxu1 }
 0x9b5   :  { %v1281_v44 = vadd.f32 %v1328_v42, %v1280_v43  ;;  %v1521_v45 = vpop.f32.mrb[41].mxu1 }
 0x9b6   :  { %v1283_v46 = vpop.f32.mrb[42].mxu1 }
 0x9b7   :  { %1286 = vst [vmem:[#allocation2] sm:$0x3] %v1281_v44  ;;  %v1522_v47 = vpop.f32.mrb[43].mxu1 }
 0x9b8   :  { %1594 = shalt.err (!%p1591_p4)
}
 0x9b9   :  { %s1595_s6 = scalar_lea.hbm %s2000_s7, 32 }
 0x9ba   :  { %p1596_p5 = scmp.ne.s32.totalorder %s2000_s7, %s1595_s6  ;;  %p1599_p6 = scmp.lt.u32.totalorder %s1595_s6, %s2000_s7 }
 0x9bc   :  { %p1601_p7 = pnand %p1599_p6, %p1596_p5 }
 0x9be   :  { %1604 = shalt.err (!%p1601_p7)
}
 0x9bf   :  { %1296 = dma.vmem_to_hbm [thread:$0]  %s1294_s3, 32, %s2000_s7, [#allocation3]  }
 0x9c0   :  { %1605 = dma.done.wait [#allocation3], 32  }
 0x9c1   :  { %1606 = vsyncadd [#allocation3], 4294967264 }
 0x9c2   :  { %1300 = vsyncpa [#allocation3], 1 }

</bundles_post_ra>
